<compile_context>
chip_gen: v7x
topology: tpu7x:2x2x1
jax: 0.10.0
libtpu: 0.0.40
codegen_flags: <defaults>
</compile_context>

<pallas_src>
import math
import functools

import jax
import jax.numpy as jnp
from jax import lax
from jax.experimental import pallas as pl
from jax.experimental.pallas import tpu as pltpu

LANE = 128
SUBLANE = 8


def _round_up(x, m):
    return ((x + m - 1) // m) * m


def _encoder_gru_kernel(tokens_ref, emb_ref, wih_ref, whh_ref, bgi_ref,
                        bhn_ref, h0_ref, out_ref, hT_ref, x_scratch,
                        *, seq_len, n_layers, hpad):
    """Fused embedding + n_layers GRU forward (batch = 1).

    tokens_ref: (seq_pad, 1)            int32   padded token ids
    emb_ref:    (vocab_pad, Hpad)       f32     zero-padded embedding table
    wih_ref:    (L, Hpad, 3*Hpad)       f32     W_ih^T, gates [r,z,n], lane-aligned
    whh_ref:    (L, Hpad, 3*Hpad)       f32     W_hh^T, gates [r,z,n], lane-aligned
    bgi_ref:    (L, 1, 3*Hpad)          f32     [b_ir+b_hr, b_iz+b_hz, b_in]
    bhn_ref:    (L, 1, Hpad)            f32     b_hn
    h0_ref:     (L, 1, Hpad)            f32     initial hidden per layer
    out_ref:    (seq_pad, Hpad)         f32     last-layer per-step hidden states
    hT_ref:     (L, 1, Hpad)            f32     final hidden per layer
    x_scratch:  (seq_pad, Hpad)         f32     inter-layer activations (VMEM)
    """
    seq_pad = x_scratch.shape[0]
    vocab_pad = emb_ref.shape[0]

    # ---- embedding: one-hot @ table (single MXU call, no gather) ----
    tok = tokens_ref[...]                                          # (seq_pad, 1)
    vocab_ids = lax.broadcasted_iota(jnp.int32, (seq_pad, vocab_pad), 1)
    onehot = (vocab_ids == tok).astype(jnp.float32)                # (seq_pad, V)
    x_scratch[...] = jnp.dot(onehot, emb_ref[...],
                             preferred_element_type=jnp.float32)   # (seq_pad, Hpad)

    if seq_pad > seq_len:
        out_ref[...] = jnp.zeros_like(out_ref)

    for l in range(n_layers):                     # static unroll over layers
        w_ih = wih_ref[l]                         # (Hpad, 3*Hpad)
        w_hh = whh_ref[l]                         # (Hpad, 3*Hpad)
        b_gi = bgi_ref[l]                         # (1, 3*Hpad)
        b_hn = bhn_ref[l]                         # (1, Hpad)

        # Hoisted input projection for the whole sequence: one batched matmul.
        gi_all = jnp.dot(x_scratch[...], w_ih,
                         preferred_element_type=jnp.float32) + b_gi

        h = h0_ref[l]                             # (1, Hpad)
        hs = []
        for t in range(seq_len):                  # static unroll over time
            gi = gi_all[t:t + 1, :]               # static slice (1, 3*Hpad)
            gh = jnp.dot(h, w_hh, preferred_element_type=jnp.float32)
            r = jax.nn.sigmoid(gi[:, :hpad] + gh[:, :hpad])
            z = jax.nn.sigmoid(gi[:, hpad:2 * hpad] + gh[:, hpad:2 * hpad])
            n = jnp.tanh(gi[:, 2 * hpad:] + r * (gh[:, 2 * hpad:] + b_hn))
            h = (1.0 - z) * n + z * h
            hs.append(h)

        hT_ref[l] = h
        layer_out = jnp.concatenate(hs, axis=0)   # (seq_len, Hpad) single store
        if l == n_layers - 1:
            out_ref[0:seq_len, :] = layer_out
        else:
            x_scratch[0:seq_len, :] = layer_out   # keep activations VMEM-resident


def encoder_gru_call(tokens_pad, emb_pad, wih, whh, bgi, bhn, h0_pad,
                     *, seq_len, n_layers, hpad):
    seq_pad = tokens_pad.shape[0]
    kernel = functools.partial(_encoder_gru_kernel, seq_len=seq_len,
                               n_layers=n_layers, hpad=hpad)
    vmem = pl.BlockSpec(memory_space=pltpu.MemorySpace.VMEM)
    out_shape = (
        jax.ShapeDtypeStruct((seq_pad, hpad), jnp.float32),
        jax.ShapeDtypeStruct((n_layers, 1, hpad), jnp.float32),
    )
    return pl.pallas_call(
        kernel,
        out_shape=out_shape,
        in_specs=[vmem] * 7,
        out_specs=(vmem, vmem),
        scratch_shapes=[pltpu.VMEM((seq_pad, hpad), jnp.float32)],
    )(tokens_pad, emb_pad, wih, whh, bgi, bhn, h0_pad)


class EncoderRNN:
    """JAX/Pallas port of the PyTorch EncoderRNN (batch = 1)."""

    def __init__(self, input_size, hidden_size, n_layers=1, key=None):
        self.input_size = input_size
        self.hidden_size = hidden_size
        self.n_layers = n_layers
        if key is None:
            key = jax.random.PRNGKey(0)

        H = hidden_size
        self.hpad = _round_up(H, LANE)
        self.vocab_pad = _round_up(input_size, LANE)

        k_emb, key = jax.random.split(key)
        # nn.Embedding default init: N(0, 1)
        self.embedding = jax.random.normal(
            k_emb, (input_size, hidden_size), dtype=jnp.float32)

        # nn.GRU default init: U(-1/sqrt(H), 1/sqrt(H)); gate order [r, z, n]
        bound = 1.0 / math.sqrt(hidden_size)
        self.layers = []
        for _ in range(n_layers):
            key, k1, k2, k3, k4 = jax.random.split(key, 5)
            w_ih = jax.random.uniform(
                k1, (3 * H, H), jnp.float32, -bound, bound)
            w_hh = jax.random.uniform(
                k2, (3 * H, H), jnp.float32, -bound, bound)
            b_ih = jax.random.uniform(k3, (3 * H,), jnp.float32, -bound, bound)
            b_hh = jax.random.uniform(k4, (3 * H,), jnp.float32, -bound, bound)
            self.layers.append(dict(
                w_ih_t=w_ih.T,              # (H, 3H)
                w_hh_t=w_hh.T,              # (H, 3H)
                b_ih=b_ih.reshape(1, -1),   # (1, 3H)
                b_hh=b_hh.reshape(1, -1),   # (1, 3H)
            ))

        self._build_kernel_params()

    def _build_kernel_params(self):
        H, Hp, Vp = self.hidden_size, self.hpad, self.vocab_pad

        self.emb_pad = jnp.zeros((Vp, Hp), jnp.float32).at[
            :self.input_size, :H].set(self.embedding)

        def pad_mat(w):   # (H, H) -> (Hp, Hp), zero padded
            return jnp.zeros((Hp, Hp), jnp.float32).at[:H, :H].set(w)

        def pad_vec(b):   # (H,) -> (1, Hp), zero padded
            return jnp.zeros((1, Hp), jnp.float32).at[0, :H].set(b)

        wih_l, whh_l, bgi_l, bhn_l = [], [], [], []
        for p in self.layers:
            w_ih_t, w_hh_t = p["w_ih_t"], p["w_hh_t"]
            b_ih, b_hh = p["b_ih"][0], p["b_hh"][0]
            wih_l.append(jnp.concatenate(
                [pad_mat(w_ih_t[:, g * H:(g + 1) * H]) for g in range(3)],
                axis=1))                                            # (Hp, 3Hp)
            whh_l.append(jnp.concatenate(
                [pad_mat(w_hh_t[:, g * H:(g + 1) * H]) for g in range(3)],
                axis=1))                                            # (Hp, 3Hp)
            bgi_l.append(jnp.concatenate(
                [pad_vec(b_ih[:H] + b_hh[:H]),
                 pad_vec(b_ih[H:2 * H] + b_hh[H:2 * H]),
                 pad_vec(b_ih[2 * H:])], axis=1))                   # (1, 3Hp)
            bhn_l.append(pad_vec(b_hh[2 * H:]))                     # (1, Hp)

        self.wih_pad = jnp.stack(wih_l)    # (L, Hp, 3Hp)
        self.whh_pad = jnp.stack(whh_l)    # (L, Hp, 3Hp)
        self.bgi_pad = jnp.stack(bgi_l)    # (L, 1, 3Hp)
        self.bhn_pad = jnp.stack(bhn_l)    # (L, 1, Hp)

    def forward(self, word_inputs, hidden):
        H, Hp = self.hidden_size, self.hpad
        seq_len = int(word_inputs.shape[0])
        seq_pad = _round_up(seq_len, SUBLANE)

        tokens_pad = jnp.zeros((seq_pad, 1), jnp.int32).at[:seq_len, 0].set(
            word_inputs.astype(jnp.int32))
        h0_pad = jnp.zeros((self.n_layers, 1, Hp), jnp.float32).at[
            :, :, :H].set(hidden)

        out_pad, hT_pad = encoder_gru_call(
            tokens_pad, self.emb_pad, self.wih_pad, self.whh_pad,
            self.bgi_pad, self.bhn_pad, h0_pad,
            seq_len=seq_len, n_layers=self.n_layers, hpad=Hp)

        output = out_pad[:seq_len, :H].reshape(seq_len, 1, H)
        hidden_out = hT_pad[:, :, :H]
        return output, hidden_out

    def init_hidden(self):
        return jnp.zeros((self.n_layers, 1, self.hidden_size), jnp.float32)


def _reference_forward(model, word_inputs, hidden):
    """Pure-JAX reference matching torch.nn.GRU semantics (unpadded params)."""
    embedded = jnp.take(model.embedding, word_inputs, axis=0)
    layer_in = embedded
    H = model.hidden_size
    new_hidden = []
    for l, p in enumerate(model.layers):
        h = hidden[l]
        outs = []
        for t in range(layer_in.shape[0]):
            x_t = layer_in[t:t + 1]
            gi = x_t @ p["w_ih_t"] + p["b_ih"]
            gh = h @ p["w_hh_t"] + p["b_hh"]
            r = jax.nn.sigmoid(gi[:, :H] + gh[:, :H])
            z = jax.nn.sigmoid(gi[:, H:2 * H] + gh[:, H:2 * H])
            n = jnp.tanh(gi[:, 2 * H:] + r * gh[:, 2 * H:])
            h = (1.0 - z) * n + z * h
            outs.append(h)
        layer_in = jnp.concatenate(outs, axis=0)
        new_hidden.append(h)
    return (layer_in.reshape(-1, 1, H), jnp.stack(new_hidden, axis=0))


if __name__ == "__main__":
    input_size = 50      # vocab size
    hidden_size = 32
    seq_len = 8

    for n_layers in (1, 2):
        key = jax.random.PRNGKey(0)
        k_model, k_inputs = jax.random.split(key)

        model = EncoderRNN(input_size, hidden_size, n_layers, key=k_model)
        word_inputs = jax.random.randint(k_inputs, (seq_len,), 0, input_size,
                                         dtype=jnp.int32)
        hidden0 = model.init_hidden()

        output, hidden = model.forward(word_inputs, hidden0)
        output = jax.block_until_ready(output)
        hidden = jax.block_until_ready(hidden)

        assert output.shape == (seq_len, 1, hidden_size)
        assert hidden.shape == (n_layers, 1, hidden_size)

        ref_out, ref_hidden = _reference_forward(model, word_inputs, hidden0)
        assert jnp.allclose(output, ref_out, atol=1e-4, rtol=1e-4)
        assert jnp.allclose(hidden, ref_hidden, atol=1e-4, rtol=1e-4)

    print("KERNEL_OK")
</pallas_src>

<mosaic_0001>
module attributes {stable_mosaic.version = 11 : i64} {
  func.func @_encoder_gru_kernel(%arg0: memref<8x1xi32, #tpu.memory_space<vmem>>, %arg1: memref<128x128xf32, #tpu.memory_space<vmem>>, %arg2: memref<1x128x384xf32, #tpu.memory_space<vmem>>, %arg3: memref<1x128x384xf32, #tpu.memory_space<vmem>>, %arg4: memref<1x1x384xf32, #tpu.memory_space<vmem>>, %arg5: memref<1x1x128xf32, #tpu.memory_space<vmem>>, %arg6: memref<1x1x128xf32, #tpu.memory_space<vmem>>, %arg7: memref<8x128xf32, #tpu.memory_space<vmem>>, %arg8: memref<1x1x128xf32, #tpu.memory_space<vmem>>, %arg9: memref<8x128xf32, #tpu.memory_space<vmem>>) attributes {dimension_semantics = [], scalar_prefetch = 0 : i64, scratch_operands = 1 : i64, tpu.core_type = #tpu.core_type<tc>} {
    %c0 = arith.constant 0 : index
    %c0_0 = arith.constant 0 : index
    %0 = vector.load %arg0[%c0, %c0_0] : memref<8x1xi32, #tpu.memory_space<vmem>>, vector<8x1xi32>
    %1 = tpu.iota {dimensions = array<i32: 1>} : vector<8x128xi32>
    %2 = vector.broadcast %0 : vector<8x1xi32> to vector<8x128xi32>
    %3 = arith.cmpi eq, %1, %2 : vector<8x128xi32>
    %4 = arith.extui %3 : vector<8x128xi1> to vector<8x128xi32>
    %5 = arith.sitofp %4 : vector<8x128xi32> to vector<8x128xf32>
    %c0_1 = arith.constant 0 : index
    %c0_2 = arith.constant 0 : index
    %6 = vector.load %arg1[%c0_1, %c0_2] : memref<128x128xf32, #tpu.memory_space<vmem>>, vector<128x128xf32>
    %cst = arith.constant dense<0.000000e+00> : vector<8x128xf32>
    %7 = tpu.matmul %5, %6, %cst {dimension_numbers = #tpu.dot_dimension_numbers<[1], [0], [0], [1], [0, 0, 1, 1], [], []>} : vector<8x128xf32>, vector<128x128xf32>, vector<8x128xf32> -> vector<8x128xf32>
    %c0_3 = arith.constant 0 : index
    %c0_4 = arith.constant 0 : index
    %8 = vector.load %arg9[%c0_3, %c0_4] : memref<8x128xf32, #tpu.memory_space<vmem>>, vector<8x128xf32>
    tpu.vector_store %arg9[%c0_3, %c0_4], %7 {strides = array<i32>} : memref<8x128xf32, #tpu.memory_space<vmem>>, vector<8x128xf32>,
    %c0_5 = arith.constant 0 : index
    %c0_6 = arith.constant 0 : index
    %c0_7 = arith.constant 0 : index
    %9 = vector.load %arg2[%c0_5, %c0_6, %c0_7] : memref<1x128x384xf32, #tpu.memory_space<vmem>>, vector<1x128x384xf32>
    %10 = vector.shape_cast %9 : vector<1x128x384xf32> to vector<128x384xf32>
    %c0_8 = arith.constant 0 : index
    %c0_9 = arith.constant 0 : index
    %c0_10 = arith.constant 0 : index
    %11 = vector.load %arg3[%c0_8, %c0_9, %c0_10] : memref<1x128x384xf32, #tpu.memory_space<vmem>>, vector<1x128x384xf32>
    %12 = vector.shape_cast %11 : vector<1x128x384xf32> to vector<128x384xf32>
    %c0_11 = arith.constant 0 : index
    %c0_12 = arith.constant 0 : index
    %c0_13 = arith.constant 0 : index
    %13 = vector.load %arg4[%c0_11, %c0_12, %c0_13] : memref<1x1x384xf32, #tpu.memory_space<vmem>>, vector<1x1x384xf32>
    %14 = vector.shape_cast %13 : vector<1x1x384xf32> to vector<1x384xf32>
    %c0_14 = arith.constant 0 : index
    %c0_15 = arith.constant 0 : index
    %c0_16 = arith.constant 0 : index
    %15 = vector.load %arg5[%c0_14, %c0_15, %c0_16] : memref<1x1x128xf32, #tpu.memory_space<vmem>>, vector<1x1x128xf32>
    %16 = vector.shape_cast %15 : vector<1x1x128xf32> to vector<1x128xf32>
    %c0_17 = arith.constant 0 : index
    %c0_18 = arith.constant 0 : index
    %17 = vector.load %arg9[%c0_17, %c0_18] : memref<8x128xf32, #tpu.memory_space<vmem>>, vector<8x128xf32>
    %cst_19 = arith.constant dense<0.000000e+00> : vector<8x384xf32>
    %18 = tpu.matmul %17, %10, %cst_19 {dimension_numbers = #tpu.dot_dimension_numbers<[1], [0], [0], [1], [0, 0, 1, 1], [], []>} : vector<8x128xf32>, vector<128x384xf32>, vector<8x384xf32> -> vector<8x384xf32>
    %19 = vector.broadcast %14 : vector<1x384xf32> to vector<8x384xf32>
    %20 = arith.addf %18, %19 : vector<8x384xf32>
    %c0_20 = arith.constant 0 : index
    %c0_21 = arith.constant 0 : index
    %c0_22 = arith.constant 0 : index
    %21 = vector.load %arg6[%c0_20, %c0_21, %c0_22] : memref<1x1x128xf32, #tpu.memory_space<vmem>>, vector<1x1x128xf32>
    %22 = vector.shape_cast %21 : vector<1x1x128xf32> to vector<1x128xf32>
    %23 = vector.extract_strided_slice %20 {offsets = [0, 0], sizes = [1, 384], strides = [1, 1]} : vector<8x384xf32> to vector<1x384xf32>
    %cst_23 = arith.constant dense<0.000000e+00> : vector<1x384xf32>
    %24 = tpu.matmul %22, %12, %cst_23 {dimension_numbers = #tpu.dot_dimension_numbers<[1], [0], [0], [1], [0, 0, 1, 1], [], []>} : vector<1x128xf32>, vector<128x384xf32>, vector<1x384xf32> -> vector<1x384xf32>
    %25 = vector.extract_strided_slice %23 {offsets = [0, 0], sizes = [1, 128], strides = [1, 1]} : vector<1x384xf32> to vector<1x128xf32>
    %26 = vector.extract_strided_slice %24 {offsets = [0, 0], sizes = [1, 128], strides = [1, 1]} : vector<1x384xf32> to vector<1x128xf32>
    %27 = arith.addf %25, %26 : vector<1x128xf32>
    %28 = arith.negf %27 : vector<1x128xf32>
    %29 = math.exp %28 : vector<1x128xf32>
    %cst_24 = arith.constant 1.000000e+00 : f32
    %30 = vector.broadcast %cst_24 : f32 to vector<1x128xf32>
    %31 = arith.addf %30, %29 : vector<1x128xf32>
    %32 = arith.divf %30, %31 : vector<1x128xf32>
    %33 = vector.extract_strided_slice %23 {offsets = [0, 128], sizes = [1, 128], strides = [1, 1]} : vector<1x384xf32> to vector<1x128xf32>
    %34 = vector.extract_strided_slice %24 {offsets = [0, 128], sizes = [1, 128], strides = [1, 1]} : vector<1x384xf32> to vector<1x128xf32>
    %35 = arith.addf %33, %34 : vector<1x128xf32>
    %36 = arith.negf %35 : vector<1x128xf32>
    %37 = math.exp %36 : vector<1x128xf32>
    %cst_25 = arith.constant 1.000000e+00 : f32
    %38 = vector.broadcast %cst_25 : f32 to vector<1x128xf32>
    %39 = arith.addf %38, %37 : vector<1x128xf32>
    %40 = arith.divf %38, %39 : vector<1x128xf32>
    %41 = vector.extract_strided_slice %23 {offsets = [0, 256], sizes = [1, 128], strides = [1, 1]} : vector<1x384xf32> to vector<1x128xf32>
    %42 = vector.extract_strided_slice %24 {offsets = [0, 256], sizes = [1, 128], strides = [1, 1]} : vector<1x384xf32> to vector<1x128xf32>
    %43 = arith.addf %42, %16 : vector<1x128xf32>
    %44 = arith.mulf %32, %43 : vector<1x128xf32>
    %45 = arith.addf %41, %44 : vector<1x128xf32>
    %46 = math.tanh %45 : vector<1x128xf32>
    %cst_26 = arith.constant 1.000000e+00 : f32
    %47 = vector.broadcast %cst_26 : f32 to vector<1x128xf32>
    %48 = arith.subf %47, %40 : vector<1x128xf32>
    %49 = arith.mulf %48, %46 : vector<1x128xf32>
    %50 = arith.mulf %40, %22 : vector<1x128xf32>
    %51 = arith.addf %49, %50 : vector<1x128xf32>
    %52 = vector.extract_strided_slice %20 {offsets = [1, 0], sizes = [1, 384], strides = [1, 1]} : vector<8x384xf32> to vector<1x384xf32>
    %cst_27 = arith.constant dense<0.000000e+00> : vector<1x384xf32>
    %53 = tpu.matmul %51, %12, %cst_27 {dimension_numbers = #tpu.dot_dimension_numbers<[1], [0], [0], [1], [0, 0, 1, 1], [], []>} : vector<1x128xf32>, vector<128x384xf32>, vector<1x384xf32> -> vector<1x384xf32>
    %54 = vector.extract_strided_slice %52 {offsets = [0, 0], sizes = [1, 128], strides = [1, 1]} : vector<1x384xf32> to vector<1x128xf32>
    %55 = vector.extract_strided_slice %53 {offsets = [0, 0], sizes = [1, 128], strides = [1, 1]} : vector<1x384xf32> to vector<1x128xf32>
    %56 = arith.addf %54, %55 : vector<1x128xf32>
    %57 = arith.negf %56 : vector<1x128xf32>
    %58 = math.exp %57 : vector<1x128xf32>
    %cst_28 = arith.constant 1.000000e+00 : f32
    %59 = vector.broadcast %cst_28 : f32 to vector<1x128xf32>
    %60 = arith.addf %59, %58 : vector<1x128xf32>
    %61 = arith.divf %59, %60 : vector<1x128xf32>
    %62 = vector.extract_strided_slice %52 {offsets = [0, 128], sizes = [1, 128], strides = [1, 1]} : vector<1x384xf32> to vector<1x128xf32>
    %63 = vector.extract_strided_slice %53 {offsets = [0, 128], sizes = [1, 128], strides = [1, 1]} : vector<1x384xf32> to vector<1x128xf32>
    %64 = arith.addf %62, %63 : vector<1x128xf32>
    %65 = arith.negf %64 : vector<1x128xf32>
    %66 = math.exp %65 : vector<1x128xf32>
    %cst_29 = arith.constant 1.000000e+00 : f32
    %67 = vector.broadcast %cst_29 : f32 to vector<1x128xf32>
    %68 = arith.addf %67, %66 : vector<1x128xf32>
    %69 = arith.divf %67, %68 : vector<1x128xf32>
    %70 = vector.extract_strided_slice %52 {offsets = [0, 256], sizes = [1, 128], strides = [1, 1]} : vector<1x384xf32> to vector<1x128xf32>
    %71 = vector.extract_strided_slice %53 {offsets = [0, 256], sizes = [1, 128], strides = [1, 1]} : vector<1x384xf32> to vector<1x128xf32>
    %72 = arith.addf %71, %16 : vector<1x128xf32>
    %73 = arith.mulf %61, %72 : vector<1x128xf32>
    %74 = arith.addf %70, %73 : vector<1x128xf32>
    %75 = math.tanh %74 : vector<1x128xf32>
    %cst_30 = arith.constant 1.000000e+00 : f32
    %76 = vector.broadcast %cst_30 : f32 to vector<1x128xf32>
    %77 = arith.subf %76, %69 : vector<1x128xf32>
    %78 = arith.mulf %77, %75 : vector<1x128xf32>
    %79 = arith.mulf %69, %51 : vector<1x128xf32>
    %80 = arith.addf %78, %79 : vector<1x128xf32>
    %81 = vector.extract_strided_slice %20 {offsets = [2, 0], sizes = [1, 384], strides = [1, 1]} : vector<8x384xf32> to vector<1x384xf32>
    %cst_31 = arith.constant dense<0.000000e+00> : vector<1x384xf32>
    %82 = tpu.matmul %80, %12, %cst_31 {dimension_numbers = #tpu.dot_dimension_numbers<[1], [0], [0], [1], [0, 0, 1, 1], [], []>} : vector<1x128xf32>, vector<128x384xf32>, vector<1x384xf32> -> vector<1x384xf32>
    %83 = vector.extract_strided_slice %81 {offsets = [0, 0], sizes = [1, 128], strides = [1, 1]} : vector<1x384xf32> to vector<1x128xf32>
    %84 = vector.extract_strided_slice %82 {offsets = [0, 0], sizes = [1, 128], strides = [1, 1]} : vector<1x384xf32> to vector<1x128xf32>
    %85 = arith.addf %83, %84 : vector<1x128xf32>
    %86 = arith.negf %85 : vector<1x128xf32>
    %87 = math.exp %86 : vector<1x128xf32>
    %cst_32 = arith.constant 1.000000e+00 : f32
    %88 = vector.broadcast %cst_32 : f32 to vector<1x128xf32>
    %89 = arith.addf %88, %87 : vector<1x128xf32>
    %90 = arith.divf %88, %89 : vector<1x128xf32>
    %91 = vector.extract_strided_slice %81 {offsets = [0, 128], sizes = [1, 128], strides = [1, 1]} : vector<1x384xf32> to vector<1x128xf32>
    %92 = vector.extract_strided_slice %82 {offsets = [0, 128], sizes = [1, 128], strides = [1, 1]} : vector<1x384xf32> to vector<1x128xf32>
    %93 = arith.addf %91, %92 : vector<1x128xf32>
    %94 = arith.negf %93 : vector<1x128xf32>
    %95 = math.exp %94 : vector<1x128xf32>
    %cst_33 = arith.constant 1.000000e+00 : f32
    %96 = vector.broadcast %cst_33 : f32 to vector<1x128xf32>
    %97 = arith.addf %96, %95 : vector<1x128xf32>
    %98 = arith.divf %96, %97 : vector<1x128xf32>
    %99 = vector.extract_strided_slice %81 {offsets = [0, 256], sizes = [1, 128], strides = [1, 1]} : vector<1x384xf32> to vector<1x128xf32>
    %100 = vector.extract_strided_slice %82 {offsets = [0, 256], sizes = [1, 128], strides = [1, 1]} : vector<1x384xf32> to vector<1x128xf32>
    %101 = arith.addf %100, %16 : vector<1x128xf32>
    %102 = arith.mulf %90, %101 : vector<1x128xf32>
    %103 = arith.addf %99, %102 : vector<1x128xf32>
    %104 = math.tanh %103 : vector<1x128xf32>
    %cst_34 = arith.constant 1.000000e+00 : f32
    %105 = vector.broadcast %cst_34 : f32 to vector<1x128xf32>
    %106 = arith.subf %105, %98 : vector<1x128xf32>
    %107 = arith.mulf %106, %104 : vector<1x128xf32>
    %108 = arith.mulf %98, %80 : vector<1x128xf32>
    %109 = arith.addf %107, %108 : vector<1x128xf32>
    %110 = vector.extract_strided_slice %20 {offsets = [3, 0], sizes = [1, 384], strides = [1, 1]} : vector<8x384xf32> to vector<1x384xf32>
    %cst_35 = arith.constant dense<0.000000e+00> : vector<1x384xf32>
    %111 = tpu.matmul %109, %12, %cst_35 {dimension_numbers = #tpu.dot_dimension_numbers<[1], [0], [0], [1], [0, 0, 1, 1], [], []>} : vector<1x128xf32>, vector<128x384xf32>, vector<1x384xf32> -> vector<1x384xf32>
    %112 = vector.extract_strided_slice %110 {offsets = [0, 0], sizes = [1, 128], strides = [1, 1]} : vector<1x384xf32> to vector<1x128xf32>
    %113 = vector.extract_strided_slice %111 {offsets = [0, 0], sizes = [1, 128], strides = [1, 1]} : vector<1x384xf32> to vector<1x128xf32>
    %114 = arith.addf %112, %113 : vector<1x128xf32>
    %115 = arith.negf %114 : vector<1x128xf32>
    %116 = math.exp %115 : vector<1x128xf32>
    %cst_36 = arith.constant 1.000000e+00 : f32
    %117 = vector.broadcast %cst_36 : f32 to vector<1x128xf32>
    %118 = arith.addf %117, %116 : vector<1x128xf32>
    %119 = arith.divf %117, %118 : vector<1x128xf32>
    %120 = vector.extract_strided_slice %110 {offsets = [0, 128], sizes = [1, 128], strides = [1, 1]} : vector<1x384xf32> to vector<1x128xf32>
    %121 = vector.extract_strided_slice %111 {offsets = [0, 128], sizes = [1, 128], strides = [1, 1]} : vector<1x384xf32> to vector<1x128xf32>
    %122 = arith.addf %120, %121 : vector<1x128xf32>
    %123 = arith.negf %122 : vector<1x128xf32>
    %124 = math.exp %123 : vector<1x128xf32>
    %cst_37 = arith.constant 1.000000e+00 : f32
    %125 = vector.broadcast %cst_37 : f32 to vector<1x128xf32>
    %126 = arith.addf %125, %124 : vector<1x128xf32>
    %127 = arith.divf %125, %126 : vector<1x128xf32>
    %128 = vector.extract_strided_slice %110 {offsets = [0, 256], sizes = [1, 128], strides = [1, 1]} : vector<1x384xf32> to vector<1x128xf32>
    %129 = vector.extract_strided_slice %111 {offsets = [0, 256], sizes = [1, 128], strides = [1, 1]} : vector<1x384xf32> to vector<1x128xf32>
    %130 = arith.addf %129, %16 : vector<1x128xf32>
    %131 = arith.mulf %119, %130 : vector<1x128xf32>
    %132 = arith.addf %128, %131 : vector<1x128xf32>
    %133 = math.tanh %132 : vector<1x128xf32>
    %cst_38 = arith.constant 1.000000e+00 : f32
    %134 = vector.broadcast %cst_38 : f32 to vector<1x128xf32>
    %135 = arith.subf %134, %127 : vector<1x128xf32>
    %136 = arith.mulf %135, %133 : vector<1x128xf32>
    %137 = arith.mulf %127, %109 : vector<1x128xf32>
    %138 = arith.addf %136, %137 : vector<1x128xf32>
    %139 = vector.extract_strided_slice %20 {offsets = [4, 0], sizes = [1, 384], strides = [1, 1]} : vector<8x384xf32> to vector<1x384xf32>
    %cst_39 = arith.constant dense<0.000000e+00> : vector<1x384xf32>
    %140 = tpu.matmul %138, %12, %cst_39 {dimension_numbers = #tpu.dot_dimension_numbers<[1], [0], [0], [1], [0, 0, 1, 1], [], []>} : vector<1x128xf32>, vector<128x384xf32>, vector<1x384xf32> -> vector<1x384xf32>
    %141 = vector.extract_strided_slice %139 {offsets = [0, 0], sizes = [1, 128], strides = [1, 1]} : vector<1x384xf32> to vector<1x128xf32>
    %142 = vector.extract_strided_slice %140 {offsets = [0, 0], sizes = [1, 128], strides = [1, 1]} : vector<1x384xf32> to vector<1x128xf32>
    %143 = arith.addf %141, %142 : vector<1x128xf32>
    %144 = arith.negf %143 : vector<1x128xf32>
    %145 = math.exp %144 : vector<1x128xf32>
    %cst_40 = arith.constant 1.000000e+00 : f32
    %146 = vector.broadcast %cst_40 : f32 to vector<1x128xf32>
    %147 = arith.addf %146, %145 : vector<1x128xf32>
    %148 = arith.divf %146, %147 : vector<1x128xf32>
    %149 = vector.extract_strided_slice %139 {offsets = [0, 128], sizes = [1, 128], strides = [1, 1]} : vector<1x384xf32> to vector<1x128xf32>
    %150 = vector.extract_strided_slice %140 {offsets = [0, 128], sizes = [1, 128], strides = [1, 1]} : vector<1x384xf32> to vector<1x128xf32>
    %151 = arith.addf %149, %150 : vector<1x128xf32>
    %152 = arith.negf %151 : vector<1x128xf32>
    %153 = math.exp %152 : vector<1x128xf32>
    %cst_41 = arith.constant 1.000000e+00 : f32
    %154 = vector.broadcast %cst_41 : f32 to vector<1x128xf32>
    %155 = arith.addf %154, %153 : vector<1x128xf32>
    %156 = arith.divf %154, %155 : vector<1x128xf32>
    %157 = vector.extract_strided_slice %139 {offsets = [0, 256], sizes = [1, 128], strides = [1, 1]} : vector<1x384xf32> to vector<1x128xf32>
    %158 = vector.extract_strided_slice %140 {offsets = [0, 256], sizes = [1, 128], strides = [1, 1]} : vector<1x384xf32> to vector<1x128xf32>
    %159 = arith.addf %158, %16 : vector<1x128xf32>
    %160 = arith.mulf %148, %159 : vector<1x128xf32>
    %161 = arith.addf %157, %160 : vector<1x128xf32>
    %162 = math.tanh %161 : vector<1x128xf32>
    %cst_42 = arith.constant 1.000000e+00 : f32
    %163 = vector.broadcast %cst_42 : f32 to vector<1x128xf32>
    %164 = arith.subf %163, %156 : vector<1x128xf32>
    %165 = arith.mulf %164, %162 : vector<1x128xf32>
    %166 = arith.mulf %156, %138 : vector<1x128xf32>
    %167 = arith.addf %165, %166 : vector<1x128xf32>
    %168 = vector.extract_strided_slice %20 {offsets = [5, 0], sizes = [1, 384], strides = [1, 1]} : vector<8x384xf32> to vector<1x384xf32>
    %cst_43 = arith.constant dense<0.000000e+00> : vector<1x384xf32>
    %169 = tpu.matmul %167, %12, %cst_43 {dimension_numbers = #tpu.dot_dimension_numbers<[1], [0], [0], [1], [0, 0, 1, 1], [], []>} : vector<1x128xf32>, vector<128x384xf32>, vector<1x384xf32> -> vector<1x384xf32>
    %170 = vector.extract_strided_slice %168 {offsets = [0, 0], sizes = [1, 128], strides = [1, 1]} : vector<1x384xf32> to vector<1x128xf32>
    %171 = vector.extract_strided_slice %169 {offsets = [0, 0], sizes = [1, 128], strides = [1, 1]} : vector<1x384xf32> to vector<1x128xf32>
    %172 = arith.addf %170, %171 : vector<1x128xf32>
    %173 = arith.negf %172 : vector<1x128xf32>
    %174 = math.exp %173 : vector<1x128xf32>
    %cst_44 = arith.constant 1.000000e+00 : f32
    %175 = vector.broadcast %cst_44 : f32 to vector<1x128xf32>
    %176 = arith.addf %175, %174 : vector<1x128xf32>
    %177 = arith.divf %175, %176 : vector<1x128xf32>
    %178 = vector.extract_strided_slice %168 {offsets = [0, 128], sizes = [1, 128], strides = [1, 1]} : vector<1x384xf32> to vector<1x128xf32>
    %179 = vector.extract_strided_slice %169 {offsets = [0, 128], sizes = [1, 128], strides = [1, 1]} : vector<1x384xf32> to vector<1x128xf32>
    %180 = arith.addf %178, %179 : vector<1x128xf32>
    %181 = arith.negf %180 : vector<1x128xf32>
    %182 = math.exp %181 : vector<1x128xf32>
    %cst_45 = arith.constant 1.000000e+00 : f32
    %183 = vector.broadcast %cst_45 : f32 to vector<1x128xf32>
    %184 = arith.addf %183, %182 : vector<1x128xf32>
    %185 = arith.divf %183, %184 : vector<1x128xf32>
    %186 = vector.extract_strided_slice %168 {offsets = [0, 256], sizes = [1, 128], strides = [1, 1]} : vector<1x384xf32> to vector<1x128xf32>
    %187 = vector.extract_strided_slice %169 {offsets = [0, 256], sizes = [1, 128], strides = [1, 1]} : vector<1x384xf32> to vector<1x128xf32>
    %188 = arith.addf %187, %16 : vector<1x128xf32>
    %189 = arith.mulf %177, %188 : vector<1x128xf32>
    %190 = arith.addf %186, %189 : vector<1x128xf32>
    %191 = math.tanh %190 : vector<1x128xf32>
    %cst_46 = arith.constant 1.000000e+00 : f32
    %192 = vector.broadcast %cst_46 : f32 to vector<1x128xf32>
    %193 = arith.subf %192, %185 : vector<1x128xf32>
    %194 = arith.mulf %193, %191 : vector<1x128xf32>
    %195 = arith.mulf %185, %167 : vector<1x128xf32>
    %196 = arith.addf %194, %195 : vector<1x128xf32>
    %197 = vector.extract_strided_slice %20 {offsets = [6, 0], sizes = [1, 384], strides = [1, 1]} : vector<8x384xf32> to vector<1x384xf32>
    %cst_47 = arith.constant dense<0.000000e+00> : vector<1x384xf32>
    %198 = tpu.matmul %196, %12, %cst_47 {dimension_numbers = #tpu.dot_dimension_numbers<[1], [0], [0], [1], [0, 0, 1, 1], [], []>} : vector<1x128xf32>, vector<128x384xf32>, vector<1x384xf32> -> vector<1x384xf32>
    %199 = vector.extract_strided_slice %197 {offsets = [0, 0], sizes = [1, 128], strides = [1, 1]} : vector<1x384xf32> to vector<1x128xf32>
    %200 = vector.extract_strided_slice %198 {offsets = [0, 0], sizes = [1, 128], strides = [1, 1]} : vector<1x384xf32> to vector<1x128xf32>
    %201 = arith.addf %199, %200 : vector<1x128xf32>
    %202 = arith.negf %201 : vector<1x128xf32>
    %203 = math.exp %202 : vector<1x128xf32>
    %cst_48 = arith.constant 1.000000e+00 : f32
    %204 = vector.broadcast %cst_48 : f32 to vector<1x128xf32>
    %205 = arith.addf %204, %203 : vector<1x128xf32>
    %206 = arith.divf %204, %205 : vector<1x128xf32>
    %207 = vector.extract_strided_slice %197 {offsets = [0, 128], sizes = [1, 128], strides = [1, 1]} : vector<1x384xf32> to vector<1x128xf32>
    %208 = vector.extract_strided_slice %198 {offsets = [0, 128], sizes = [1, 128], strides = [1, 1]} : vector<1x384xf32> to vector<1x128xf32>
    %209 = arith.addf %207, %208 : vector<1x128xf32>
    %210 = arith.negf %209 : vector<1x128xf32>
    %211 = math.exp %210 : vector<1x128xf32>
    %cst_49 = arith.constant 1.000000e+00 : f32
    %212 = vector.broadcast %cst_49 : f32 to vector<1x128xf32>
    %213 = arith.addf %212, %211 : vector<1x128xf32>
    %214 = arith.divf %212, %213 : vector<1x128xf32>
    %215 = vector.extract_strided_slice %197 {offsets = [0, 256], sizes = [1, 128], strides = [1, 1]} : vector<1x384xf32> to vector<1x128xf32>
    %216 = vector.extract_strided_slice %198 {offsets = [0, 256], sizes = [1, 128], strides = [1, 1]} : vector<1x384xf32> to vector<1x128xf32>
    %217 = arith.addf %216, %16 : vector<1x128xf32>
    %218 = arith.mulf %206, %217 : vector<1x128xf32>
    %219 = arith.addf %215, %218 : vector<1x128xf32>
    %220 = math.tanh %219 : vector<1x128xf32>
    %cst_50 = arith.constant 1.000000e+00 : f32
    %221 = vector.broadcast %cst_50 : f32 to vector<1x128xf32>
    %222 = arith.subf %221, %214 : vector<1x128xf32>
    %223 = arith.mulf %222, %220 : vector<1x128xf32>
    %224 = arith.mulf %214, %196 : vector<1x128xf32>
    %225 = arith.addf %223, %224 : vector<1x128xf32>
    %226 = vector.extract_strided_slice %20 {offsets = [7, 0], sizes = [1, 384], strides = [1, 1]} : vector<8x384xf32> to vector<1x384xf32>
    %cst_51 = arith.constant dense<0.000000e+00> : vector<1x384xf32>
    %227 = tpu.matmul %225, %12, %cst_51 {dimension_numbers = #tpu.dot_dimension_numbers<[1], [0], [0], [1], [0, 0, 1, 1], [], []>} : vector<1x128xf32>, vector<128x384xf32>, vector<1x384xf32> -> vector<1x384xf32>
    %228 = vector.extract_strided_slice %226 {offsets = [0, 0], sizes = [1, 128], strides = [1, 1]} : vector<1x384xf32> to vector<1x128xf32>
    %229 = vector.extract_strided_slice %227 {offsets = [0, 0], sizes = [1, 128], strides = [1, 1]} : vector<1x384xf32> to vector<1x128xf32>
    %230 = arith.addf %228, %229 : vector<1x128xf32>
    %231 = arith.negf %230 : vector<1x128xf32>
    %232 = math.exp %231 : vector<1x128xf32>
    %cst_52 = arith.constant 1.000000e+00 : f32
    %233 = vector.broadcast %cst_52 : f32 to vector<1x128xf32>
    %234 = arith.addf %233, %232 : vector<1x128xf32>
    %235 = arith.divf %233, %234 : vector<1x128xf32>
    %236 = vector.extract_strided_slice %226 {offsets = [0, 128], sizes = [1, 128], strides = [1, 1]} : vector<1x384xf32> to vector<1x128xf32>
    %237 = vector.extract_strided_slice %227 {offsets = [0, 128], sizes = [1, 128], strides = [1, 1]} : vector<1x384xf32> to vector<1x128xf32>
    %238 = arith.addf %236, %237 : vector<1x128xf32>
    %239 = arith.negf %238 : vector<1x128xf32>
    %240 = math.exp %239 : vector<1x128xf32>
    %cst_53 = arith.constant 1.000000e+00 : f32
    %241 = vector.broadcast %cst_53 : f32 to vector<1x128xf32>
    %242 = arith.addf %241, %240 : vector<1x128xf32>
    %243 = arith.divf %241, %242 : vector<1x128xf32>
    %244 = vector.extract_strided_slice %226 {offsets = [0, 256], sizes = [1, 128], strides = [1, 1]} : vector<1x384xf32> to vector<1x128xf32>
    %245 = vector.extract_strided_slice %227 {offsets = [0, 256], sizes = [1, 128], strides = [1, 1]} : vector<1x384xf32> to vector<1x128xf32>
    %246 = arith.addf %245, %16 : vector<1x128xf32>
    %247 = arith.mulf %235, %246 : vector<1x128xf32>
    %248 = arith.addf %244, %247 : vector<1x128xf32>
    %249 = math.tanh %248 : vector<1x128xf32>
    %cst_54 = arith.constant 1.000000e+00 : f32
    %250 = vector.broadcast %cst_54 : f32 to vector<1x128xf32>
    %251 = arith.subf %250, %243 : vector<1x128xf32>
    %252 = arith.mulf %251, %249 : vector<1x128xf32>
    %253 = arith.mulf %243, %225 : vector<1x128xf32>
    %254 = arith.addf %252, %253 : vector<1x128xf32>
    %c0_55 = arith.constant 0 : index
    %c0_56 = arith.constant 0 : index
    %c0_57 = arith.constant 0 : index
    %255 = vector.load %arg8[%c0_55, %c0_56, %c0_57] : memref<1x1x128xf32, #tpu.memory_space<vmem>>, vector<1x1x128xf32>
    %256 = vector.shape_cast %255 : vector<1x1x128xf32> to vector<1x128xf32>
    %257 = vector.shape_cast %254 : vector<1x128xf32> to vector<1x1x128xf32>
    tpu.vector_store %arg8[%c0_55, %c0_56, %c0_57], %257 {strides = array<i32>} : memref<1x1x128xf32, #tpu.memory_space<vmem>>, vector<1x1x128xf32>,
    %258 = tpu.concatenate %51, %80, %109, %138, %167, %196, %225, %254 in 0 : vector<1x128xf32>, vector<1x128xf32>, vector<1x128xf32>, vector<1x128xf32>, vector<1x128xf32>, vector<1x128xf32>, vector<1x128xf32>, vector<1x128xf32> -> vector<8x128xf32>
    %c0_58 = arith.constant 0 : index
    %c0_59 = arith.constant 0 : index
    %259 = vector.load %arg7[%c0_58, %c0_59] : memref<8x128xf32, #tpu.memory_space<vmem>>, vector<8x128xf32>
    tpu.vector_store %arg7[%c0_58, %c0_59], %258 {strides = array<i32>} : memref<8x128xf32, #tpu.memory_space<vmem>>, vector<8x128xf32>,
    return
  }
}

</mosaic_0001>

<bundles_post_ra>
// kernel: tpu_custom_call.1
= control target key start
LH: loop header
LB: loop body
LE: loop exit
PB: predicated region body
PF: predicated region fallthrough
CT: control target
= control target key end

     0   :  { %14 = vsyncpa [#allocation4], 0  ;;  %s3727_s0 = inlined_call_operand.vmem [shape: s32[8,1], index: 0, kind: input, shape index: {}]   ;;  %s3728_s1 = inlined_call_operand.hbm [shape: f32[128,128], index: 1, kind: input, shape index: {}]   ;;  %s3729_s2 = inlined_call_operand.hbm [shape: f32[1,128,384], index: 2, kind: input, shape index: {}]   ;;  %s3730_s3 = inlined_call_operand.hbm [shape: f32[1,128,384], index: 3, kind: input, shape index: {}]   ;;  %s3731_s4 = inlined_call_operand.vmem [shape: f32[1,1,384], index: 4, kind: input, shape index: {}]   ;;  %s3732_s5 = inlined_call_operand.vmem [shape: f32[1,1,128], index: 5, kind: input, shape index: {}]   ;;  %s3733_s6 = inlined_call_operand.vmem [shape: f32[1,1,128], index: 6, kind: input, shape index: {}]   ;;  %s3734_s7 = inlined_call_operand.hbm [shape: f32[8,128], index: 7, kind: output, shape index: {0}]   ;;  %s3735_s8 = inlined_call_operand.hbm [shape: f32[1,1,128], index: 8, kind: output, shape index: {1}]  }
   0x1   :  { %15 = vsyncpa [#allocation7], 0 }
   0x2   :  { %16 = vsyncpa [#allocation5], 0 }
   0x3   :  { %17 = vsyncpa [#allocation11], 0  ;;  %s3149_s27 = smov [#allocation6]   ;;  %s3031_s9 = scalar_lea.hbm %s3729_s2, 6144 }
   0x4   :  { %s37_s28 = sshll.u32 %s3149_s27, 4  ;;  %p3032_p0 = scmp.ne.s32.totalorder %s3729_s2, %s3031_s9  ;;  %s38_s28 = int_to_ptr.vmem [resolvable:$true] %s37_s28 }
   0x5   :  { %p3035_p1 = scmp.lt.u32.totalorder %s3031_s9, %s3729_s2 }
   0x7   :  { %p3037_p2 = pnand %p3035_p1, %p3032_p0 }
   0x9   :  { %3040 = shalt.err (!%p3037_p2)
}
   0xa   :  { %s3041_s14 = scalar_lea.vmem %s38_s28, 6144  ;;  %p3046_p4 = scmp.lt.s32.totalorder %s38_s28, %s38_s28 }
   0xb   :  { %p3042_p3 = scmp.ne.s32.totalorder %s38_s28, %s3041_s14  ;;  %p3047_p5 = scmp.lt.s32.totalorder %s3041_s14, %s3041_s14 }
   0xd   :  { %p3048_p6 = por %p3047_p5, %p3046_p4 }
   0xf   :  { %p3049_p7 = pnand %p3048_p6, %p3042_p3 }
  0x11   :  { %3052 = shalt.err (!%p3049_p7)
}
  0x12   :  { %s3150_s15 = smov 384   ;;  %s3151_s16 = smov 24  }
  0x13   :  { %43 = dma.hbm_to_vmem [thread:$0]  %s3729_s2, 6144, %s38_s28, [#allocation7], %s3150_s15, %s3150_s15, %s3151_s16  }
  0x14   :  { %s3152_s19 = smov [#allocation3]   ;;  %s3053_s23 = scalar_lea.hbm %s3728_s1, 2048 }
  0x15   :  { %s25_s20 = sshll.u32 %s3152_s19, 4  ;;  %p3054_p8 = scmp.ne.s32.totalorder %s3728_s1, %s3053_s23  ;;  %s26_s20 = int_to_ptr.vmem [resolvable:$true] %s25_s20 }
  0x16   :  { %p3057_p9 = scmp.lt.u32.totalorder %s3053_s23, %s3728_s1 }
  0x18   :  { %p3059_p10 = pnand %p3057_p9, %p3054_p8 }
  0x1a   :  { %3062 = shalt.err (!%p3059_p10)
}
  0x1b   :  { %s3063_s29 = scalar_lea.vmem %s26_s20, 2048  ;;  %p3068_p12 = scmp.lt.s32.totalorder %s26_s20, %s26_s20 }
  0x1c   :  { %p3064_p11 = scmp.ne.s32.totalorder %s26_s20, %s3063_s29  ;;  %p3069_p13 = scmp.lt.s32.totalorder %s3063_s29, %s3063_s29 }
  0x1e   :  { %p3070_p0 = por %p3069_p13, %p3068_p12 }
  0x20   :  { %p3071_p1 = pnand %p3070_p0, %p3064_p11 }
  0x22   :  { %3074 = shalt.err (!%p3071_p1)
}
  0x23   :  { %s3153_s2 = smov 128   ;;  %s3154_s28 = smov 8  }
  0x24   :  { %31 = dma.hbm_to_vmem [thread:$0]  %s3728_s1, 2048, %s26_s20, [#allocation4], %s3153_s2, %s3153_s2, %s3154_s28  }
  0x25   :  { %s3155_s10 = smov [#allocation8]   ;;  %s3075_s14 = scalar_lea.hbm %s3730_s3, 6144 }
  0x26   :  { %s49_s11 = sshll.u32 %s3155_s10, 4  ;;  %p3076_p2 = scmp.ne.s32.totalorder %s3730_s3, %s3075_s14  ;;  %s50_s11 = int_to_ptr.vmem [resolvable:$true] %s49_s11 }
  0x27   :  { %p3079_p3 = scmp.lt.u32.totalorder %s3075_s14, %s3730_s3 }
  0x29   :  { %p3081_p4 = pnand %p3079_p3, %p3076_p2 }
  0x2b   :  { %3084 = shalt.err (!%p3081_p4)
}
  0x2c   :  { %s3085_s22 = scalar_lea.vmem %s50_s11, 6144  ;;  %p3090_p6 = scmp.lt.s32.totalorder %s50_s11, %s50_s11 }
  0x2d   :  { %p3086_p5 = scmp.ne.s32.totalorder %s50_s11, %s3085_s22  ;;  %p3091_p7 = scmp.lt.s32.totalorder %s3085_s22, %s3085_s22 }
  0x2f   :  { %p3092_p8 = por %p3091_p7, %p3090_p6 }
  0x31   :  { %p3093_p9 = pnand %p3092_p8, %p3086_p5 }
  0x33   :  { %3096 = shalt.err (!%p3093_p9)
}
  0x34   :  { %55 = dma.hbm_to_vmem [thread:$0]  %s3730_s3, 6144, %s50_s11, [#allocation7], %s3150_s15, %s3150_s15, %s3151_s16  }
  0x35   :  { %3141 = dma.done.wait [#allocation4], 2048  }
  0x36   :  { %3142 = vsyncadd [#allocation4], 4294965248 }
  0x37   :  { %3143 = dma.done.wait [#allocation7], 12288  }
  0x38   :  { %3144 = vsyncadd [#allocation7], 4294955008  ;;  %v3156_v0 = vmov 0   ;;  %v3157_v1 = vmov 0.0|0.0   ;;  %v71_v2 = vld [vmem:[%s3727_s0] sm:$0xff]  ;;  %v81_v4 = vld [vmem:[#allocation3 + $0x8] sm:$0xff] }
  0x39   :  { %2950 = vset.pattern.permute.xlu0 %v3156_v0  ;;  %2408 = vmatprep.subr.bf16.mxu0 %v3157_v1  ;;  %v80_v3 = vld [vmem:[#allocation3] sm:$0xff]  ;;  %v82_v6 = vld [vmem:[#allocation3 + $0x10] sm:$0xff]  ;;  %v83_v7 = vld [vmem:[#allocation3 + $0x18] sm:$0xff]  ;;  %vm3158_vm0 = vmmov 0   ;;  %v3159_v8 = vmov 0.0   ;;  %vm1825_vm2 = vcmask 1040384  }
  0x3a   :  { %75 = vperm.xlu0 %2950, %v71_v2   ;;  %v2409_v5 = vpack.c.bf16 %v81_v4, %v80_v3  ;;  %2090 = vmatprep.mubr.msk.f32.mxu0 %vm3158_vm0, %v3159_v8  ;;  %v2412_v9 = vpack.c.bf16 %v83_v7, %v82_v6  ;;  %v84_v10 = vld [vmem:[#allocation3 + $0x20] sm:$0xff]  ;;  %v85_v11 = vld [vmem:[#allocation3 + $0x28] sm:$0xff]  ;;  %v170_v15 = vld [vmem:[#allocation6 + $0x18] sm:$0xff]  ;;  %vm1827_vm3 = vcmask 1041408   ;;  %vm1829_vm4 = vcmask 1042432   ;;  %s3162_s26 = smov [#allocation9]  }
  0x3b   :  { %346 = vmatprep.mubr.f32.mxu1 %v3159_v8  ;;  %v168_v12 = vld [vmem:[#allocation6 + $0x8] sm:$0xff]  ;;  %v171_v13 = vld [vmem:[#allocation6 + $0x20] sm:$0xff]  ;;  %v2415_v16 = vpack.c.bf16 %v85_v11, %v84_v10  ;;  %v86_v17 = vld [vmem:[#allocation3 + $0x30] sm:$0xff]  ;;  %vm1831_vm5 = vcmask 1043456   ;;  %vm1833_vm6 = vcmask 1044480   ;;  %vm1835_vm7 = vcmask 1045504  }
  0x3c   :  { %2410 = vmatpush3.bf16.msra.mxu0 %v2409_v5  ;;  %v167_v14 = vld [vmem:[#allocation6] sm:$0xff]  ;;  %v87_v18 = vld [vmem:[#allocation3 + $0x38] sm:$0xff]  ;;  %v2432_v19 = vpack.c.bf16 %v171_v13, %v168_v12  ;;  %v177_v22 = vld [vmem:[#allocation6 + $0x50] sm:$0xff]  ;;  %s1846_s27 = sshll.u32 %s3162_s26, 4  ;;  %vm1837_vm8 = vcmask 1046528   ;;  %s3696_s27 = int_to_ptr.vmem [resolvable:$true] %s1846_s27 }
  0x3d   :  { %2411 = vmatprep.subr.bf16.mxu0 %v3157_v1  ;;  %v2434_v20 = vpack.c.bf16 %v170_v15, %v167_v14  ;;  %v174_v21 = vld [vmem:[#allocation6 + $0x38] sm:$0xff]  ;;  %v173_v23 = vld [vmem:[#allocation6 + $0x30] sm:$0xff]  ;;  %v176_v24 = vld [vmem:[#allocation6 + $0x48] sm:$0xff]  ;;  %v2418_v29 = vpack.c.bf16 %v87_v18, %v86_v17  ;;  %v72_v14 = vlaneseq }
  0x3e   :  { %2433 = vmatprep.subr.bf16.mxu1 %v2432_v19  ;;  %v2436_v25 = vpack.c.bf16 %v177_v22, %v174_v21  ;;  %v180_v26 = vld [vmem:[#allocation6 + $0x68] sm:$0xff]  ;;  %v2438_v27 = vpack.c.bf16 %v176_v24, %v173_v23  ;;  %v183_v28 = vld [vmem:[#allocation6 + $0x80] sm:$0xff]  ;;  %v182_v33 = vld [vmem:[#allocation6 + $0x78] sm:$0xff]  ;;  %v3160_v22 = vmov 1.0  }
  0x3f   :  { %2435 = vmatpush1.bf16.msra.mxu1 %v2434_v20  ;;  %v88_v30 = vld [vmem:[#allocation3 + $0x40] sm:$0xff]  ;;  %v2440_v31 = vpack.c.bf16 %v183_v28, %v180_v26  ;;  %v89_v34 = vld [vmem:[#allocation3 + $0x48] sm:$0xff]  ;;  %v186_v35 = vld [vmem:[#allocation6 + $0x98] sm:$0xff]  ;;  %v73_v17 = vand.u32 127, %v72_v14 }
  0x40   :  { %2413 = vmatpush3.bf16.msra.mxu0 %v2412_v9  ;;  %2437 = vmatprep.subr.bf16.mxu1 %v2436_v25  ;;  %v179_v32 = vld [vmem:[#allocation6 + $0x60] sm:$0xff]  ;;  %v189_v36 = vld [vmem:[#allocation6 + $0xb0] sm:$0xff]  ;;  %v2421_v38 = vpack.c.bf16 %v89_v34, %v88_v30  ;;  %v188_v42 = vld [vmem:[#allocation6 + $0xa8] sm:$0xff] }
  0x41   :  { %2414 = vmatprep.subr.bf16.mxu0 %v3157_v1  ;;  %v2442_v37 = vpack.c.bf16 %v182_v33, %v179_v32  ;;  %v90_v39 = vld [vmem:[#allocation3 + $0x50] sm:$0xff]  ;;  %v2444_v40 = vpack.c.bf16 %v189_v36, %v186_v35  ;;  %v91_v43 = vld [vmem:[#allocation3 + $0x58] sm:$0xff]  ;;  %v192_v44 = vld [vmem:[#allocation6 + $0xc8] sm:$0xff] }
  0x42   :  { %v185_v41 = vld [vmem:[#allocation6 + $0x90] sm:$0xff]  ;;  %v195_v45 = vld [vmem:[#allocation6 + $0xe0] sm:$0xff]  ;;  %v2424_v47 = vpack.c.bf16 %v91_v43, %v90_v39  ;;  %v194_v51 = vld [vmem:[#allocation6 + $0xd8] sm:$0xff] }
  0x43   :  { %2439 = vmatpush1.bf16.msra.mxu1 %v2438_v27  ;;  %v2446_v46 = vpack.c.bf16 %v188_v42, %v185_v41  ;;  %v92_v48 = vld [vmem:[#allocation3 + $0x60] sm:$0xff]  ;;  %v2448_v49 = vpack.c.bf16 %v195_v45, %v192_v44  ;;  %v93_v52 = vld [vmem:[#allocation3 + $0x68] sm:$0xff]  ;;  %v198_v53 = vld [vmem:[#allocation6 + $0xf8] sm:$0xff] }
  0x44   :  { %2416 = vmatpush3.bf16.msra.mxu0 %v2415_v16  ;;  %2441 = vmatprep.subr.bf16.mxu1 %v2440_v31  ;;  %v191_v50 = vld [vmem:[#allocation6 + $0xc0] sm:$0xff]  ;;  %v201_v54 = vld [vmem:[#allocation6 + $0x110] sm:$0xff]  ;;  %v2427_v56 = vpack.c.bf16 %v93_v52, %v92_v48  ;;  %v200_v60 = vld [vmem:[#allocation6 + $0x108] sm:$0xff] }
  0x45   :  { %2417 = vmatprep.subr.bf16.mxu0 %v3157_v1  ;;  %v2450_v55 = vpack.c.bf16 %v194_v51, %v191_v50  ;;  %v94_v57 = vld [vmem:[#allocation3 + $0x70] sm:$0xff]  ;;  %v2452_v58 = vpack.c.bf16 %v201_v54, %v198_v53  ;;  %v95_v61 = vld [vmem:[#allocation3 + $0x78] sm:$0xff]  ;;  %v204_v62 = vld [vmem:[#allocation6 + $0x128] sm:$0xff] }
  0x46   :  { %v197_v59 = vld [vmem:[#allocation6 + $0xf0] sm:$0xff]  ;;  %v207_v63 = vld [vmem:[#allocation6 + $0x140] sm:$0xff]  ;;  %v2430_v2 = vpack.c.bf16 %v95_v61, %v94_v57  ;;  %v206_v5 = vld [vmem:[#allocation6 + $0x138] sm:$0xff] }
  0x47   :  { %2443 = vmatpush1.bf16.msra.mxu1 %v2442_v37  ;;  %v2454_v0 = vpack.c.bf16 %v200_v60, %v197_v59  ;;  %v2456_v3 = vpack.c.bf16 %v207_v63, %v204_v62  ;;  %v203_v4 = vld [vmem:[#allocation6 + $0x120] sm:$0xff]  ;;  %v210_v6 = vld [vmem:[#allocation6 + $0x158] sm:$0xff]  ;;  %v213_v7 = vld [vmem:[#allocation6 + $0x170] sm:$0xff] }
  0x48   :  { %2419 = vmatpush3.bf16.msra.mxu0 %v2418_v29  ;;  %2445 = vmatprep.subr.bf16.mxu1 %v2444_v40  ;;  %v2458_v9 = vpack.c.bf16 %v206_v5, %v203_v4  ;;  %v2460_v10 = vpack.c.bf16 %v213_v7, %v210_v6  ;;  %v209_v11 = vld [vmem:[#allocation6 + $0x150] sm:$0xff]  ;;  %v212_v12 = vld [vmem:[#allocation6 + $0x168] sm:$0xff]  ;;  %v175_v20 = vld [vmem:[#allocation6 + $0x40] sm:$0xff] }
  0x49   :  { %2420 = vmatprep.subr.bf16.mxu0 %v3157_v1  ;;  %v2462_v13 = vpack.c.bf16 %v212_v12, %v209_v11  ;;  %v169_v15 = vld [vmem:[#allocation6 + $0x10] sm:$0xff]  ;;  %v172_v16 = vld [vmem:[#allocation6 + $0x28] sm:$0xff]  ;;  %v178_v21 = vld [vmem:[#allocation6 + $0x58] sm:$0xff] }
  0x4a   :  { %v2465_v18 = vpack.c.bf16 %v172_v16, %v169_v15  ;;  %v2468_v23 = vpack.c.bf16 %v178_v21, %v175_v20  ;;  %v181_v24 = vld [vmem:[#allocation6 + $0x70] sm:$0xff]  ;;  %v184_v25 = vld [vmem:[#allocation6 + $0x88] sm:$0xff]  ;;  %v187_v27 = vld [vmem:[#allocation6 + $0xa0] sm:$0xff] }
  0x4b   :  { %2447 = vmatpush1.bf16.msra.mxu1 %v2446_v46  ;;  %v2471_v26 = vpack.c.bf16 %v184_v25, %v181_v24  ;;  %v190_v28 = vld [vmem:[#allocation6 + $0xb8] sm:$0xff]  ;;  %v193_v30 = vld [vmem:[#allocation6 + $0xd0] sm:$0xff]  ;;  %v196_v31 = vld [vmem:[#allocation6 + $0xe8] sm:$0xff] }
  0x4c   :  { %2422 = vmatpush3.bf16.msra.mxu0 %v2421_v38  ;;  %2449 = vmatprep.subr.bf16.mxu1 %v2448_v49  ;;  %v2474_v29 = vpack.c.bf16 %v190_v28, %v187_v27  ;;  %v2477_v32 = vpack.c.bf16 %v196_v31, %v193_v30  ;;  %v199_v33 = vld [vmem:[#allocation6 + $0x100] sm:$0xff]  ;;  %v202_v34 = vld [vmem:[#allocation6 + $0x118] sm:$0xff]  ;;  %v205_v36 = vld [vmem:[#allocation6 + $0x130] sm:$0xff] }
  0x4d   :  { %2423 = vmatprep.subr.bf16.mxu0 %v3157_v1  ;;  %v2480_v35 = vpack.c.bf16 %v202_v34, %v199_v33  ;;  %v208_v37 = vld [vmem:[#allocation6 + $0x148] sm:$0xff]  ;;  %v211_v39 = vld [vmem:[#allocation6 + $0x160] sm:$0xff]  ;;  %v214_v40 = vld [vmem:[#allocation6 + $0x178] sm:$0xff] }
  0x4e   :  { %v2483_v38 = vpack.c.bf16 %v208_v37, %v205_v36  ;;  %v2486_v41 = vpack.c.bf16 %v214_v40, %v211_v39  ;;  %v216_v42 = vld [vmem:[#allocation8 + $0x8] sm:$0xff]  ;;  %v219_v43 = vld [vmem:[#allocation8 + $0x20] sm:$0xff]  ;;  %v218_v46 = vld [vmem:[#allocation8 + $0x18] sm:$0xff] }
  0x4f   :  { %2451 = vmatpush1.bf16.msra.mxu1 %v2450_v55  ;;  %v3276_v44 = vpack.c.bf16 %v219_v43, %v216_v42  ;;  %v215_v45 = vld [vmem:[#allocation8] sm:$0xff]  ;;  %v220_v48 = vld [vmem:[#allocation8 + $0x28] sm:$0xff]  ;;  %v222_v49 = vld [vmem:[#allocation8 + $0x38] sm:$0xff] }
  0x50   :  { %2425 = vmatpush3.bf16.msra.mxu0 %v2424_v47  ;;  %2453 = vmatprep.subr.bf16.mxu1 %v2452_v58  ;;  %v217_v47 = vld [vmem:[#allocation8 + $0x10] sm:$0xff]  ;;  %v3279_v51 = vpack.c.bf16 %v218_v46, %v215_v45  ;;  %v224_v55 = vld [vmem:[#allocation8 + $0x48] sm:$0xff]  ;;  %v226_v57 = vld [vmem:[#allocation8 + $0x58] sm:$0xff] }
  0x51   :  { %2426 = vmatprep.subr.bf16.mxu0 %v3157_v1  ;;  %v225_v50 = vld [vmem:[#allocation8 + $0x50] sm:$0xff]  ;;  %v3281_v53 = vpack.c.bf16 %v220_v48, %v217_v47  ;;  %v228_v59 = vld [vmem:[#allocation8 + $0x68] sm:$0xff]  ;;  %v231_v60 = vld [vmem:[#allocation8 + $0x80] sm:$0xff] }
  0x52   :  { %v221_v52 = vld [vmem:[#allocation8 + $0x30] sm:$0xff]  ;;  %v3283_v54 = vpack.c.bf16 %v225_v50, %v222_v49  ;;  %v227_v63 = vld [vmem:[#allocation8 + $0x60] sm:$0xff]  ;;  %v232_v5 = vld [vmem:[#allocation8 + $0x88] sm:$0xff] }
  0x53   :  { %2455 = vmatpush1.bf16.msra.mxu1 %v2454_v0  ;;  %v3286_v62 = vpack.c.bf16 %v224_v55, %v221_v52  ;;  %v229_v4 = vld [vmem:[#allocation8 + $0x70] sm:$0xff]  ;;  %v234_v6 = vld [vmem:[#allocation8 + $0x98] sm:$0xff]  ;;  %v235_v15 = vld [vmem:[#allocation8 + $0xa0] sm:$0xff] }
  0x54   :  { %2428 = vmatpush3.bf16.msra.mxu0 %v2427_v56  ;;  %2457 = vmatprep.subr.bf16.mxu1 %v2456_v3  ;;  %v223_v56 = vld [vmem:[#allocation8 + $0x40] sm:$0xff]  ;;  %v230_v3 = vld [vmem:[#allocation8 + $0x78] sm:$0xff]  ;;  %v237_v7 = vld [vmem:[#allocation8 + $0xb0] sm:$0xff]  ;;  %v3302_v11 = vpack.c.bf16 %v232_v5, %v229_v4 }
  0x55   :  { %2429 = vmatprep.subr.bf16.mxu0 %v3157_v1  ;;  %v3289_v0 = vpack.c.bf16 %v226_v57, %v223_v56  ;;  %v3305_v12 = vpack.c.bf16 %v237_v7, %v234_v6  ;;  %v238_v16 = vld [vmem:[#allocation8 + $0xb8] sm:$0xff]  ;;  %v239_v20 = vld [vmem:[#allocation8 + $0xc0] sm:$0xff]  ;;  %v241_v24 = vld [vmem:[#allocation8 + $0xd0] sm:$0xff] }
  0x56   :  { %v3312_v21 = vpack.c.bf16 %v238_v16, %v235_v15  ;;  %v244_v25 = vld [vmem:[#allocation8 + $0xe8] sm:$0xff]  ;;  %v249_v27 = vld [vmem:[#allocation8 + $0x110] sm:$0xff]  ;;  %v247_v33 = vld [vmem:[#allocation8 + $0x100] sm:$0xff] }
  0x57   :  { %2459 = vmatpush1.bf16.msra.mxu1 %v2458_v9  ;;  %v3299_v9 = vpack.c.bf16 %v230_v3, %v227_v63  ;;  %v3322_v30 = vpack.c.bf16 %v244_v25, %v241_v24  ;;  %v250_v34 = vld [vmem:[#allocation8 + $0x118] sm:$0xff]  ;;  %v255_v36 = vld [vmem:[#allocation8 + $0x140] sm:$0xff]  ;;  %v253_v42 = vld [vmem:[#allocation8 + $0x130] sm:$0xff] }
  0x58   :  { %2431 = vmatpush3.bf16.msra.mxu0 %v2430_v2  ;;  %2461 = vmatprep.subr.bf16.mxu1 %v2460_v10  ;;  %v3292_v2 = vpack.c.bf16 %v231_v60, %v228_v59  ;;  %v233_v10 = vld [vmem:[#allocation8 + $0x90] sm:$0xff]  ;;  %v3332_v39 = vpack.c.bf16 %v250_v34, %v247_v33  ;;  %v256_v43 = vld [vmem:[#allocation8 + $0x148] sm:$0xff]  ;;  %v258_v45 = vld [vmem:[#allocation8 + $0x158] sm:$0xff]  ;;  %v268_v60 = vshrl.u32 %v72_v14, 7 }
  0x59   :  { %2464 = vmatprep.subr.bf16.mxu0 %v3157_v1  ;;  %v261_v46 = vld [vmem:[#allocation8 + $0x170] sm:$0xff]  ;;  %v3342_v49 = vpack.c.bf16 %v256_v43, %v253_v42  ;;  %v260_v52 = vld [vmem:[#allocation8 + $0x168] sm:$0xff]  ;;  %v259_v55 = vld [vmem:[#allocation8 + $0x160] sm:$0xff] }
  0x5a   :  { %v257_v48 = vld [vmem:[#allocation8 + $0x150] sm:$0xff]  ;;  %v3345_v50 = vpack.c.bf16 %v261_v46, %v258_v45  ;;  %v262_v56 = vld [vmem:[#allocation8 + $0x178] sm:$0xff]  ;;  %v3360_v59 = vld [vmem:[%s3733_s6] sm:$0x1]  ;;  %v277_v63 = vsub.s32 2, %v268_v60  ;;  %v273_v4 = vsub.s32 1, %v268_v60 }
  0x5b   :  { %2463 = vmatpush1.bf16.msra.mxu1 %v2462_v13  ;;  %v236_v13 = vld [vmem:[#allocation8 + $0xa8] sm:$0xff]  ;;  %v3349_v57 = vpack.c.bf16 %v260_v52, %v257_v48  ;;  %v263_v3 = vld [vmem:[%s3731_s4] sm:$0x7] }
  0x5c   :  { %2489 = vmatprep.subr.bf16.mxu1 %v3276_v44  ;;  %v278_v6 = vrot.slane %v263_v3, %v277_v63  ;;  %v274_v7 = vrot.slane %v263_v3, %v273_v4 }
  0xb9   :  { %v76_v19 = vpop.permute.xlu0 %75 }
  0xba   :  { %vm77_vm1 = vcmp.eq.s32.totalorder %v73_v17, %v76_v19  ;;  %v240_v17 = vld [vmem:[#allocation8 + $0xc8] sm:$0xff]  ;;  %v3309_v19 = vpack.c.bf16 %v236_v13, %v233_v10 }
  0xbb   :  { %2091 = vmatmul.mubr.msk.f32.vlgmr.msra.gmra.mrb[0].mxu0 %vm77_vm1, %v3160_v22 }
  0xbc   :  { %2466 = vmatpush3.bf16.msra.mxu0 %v2465_v18  ;;  %2125 = vmatprep.mubr.msk.f32.mxu0 %vm3158_vm0, %v3159_v8  ;;  %v243_v18 = vld [vmem:[#allocation8 + $0xe0] sm:$0xff] }
  0xbd   :  { %2467 = vmatprep.subr.bf16.mxu0 %v3157_v1  ;;  %v3315_v22 = vpack.c.bf16 %v243_v18, %v240_v17 }
  0xc0   :  { %2469 = vmatpush3.bf16.msra.mxu0 %v2468_v23  ;;  %v242_v23 = vld [vmem:[#allocation8 + $0xd8] sm:$0xff] }
  0xc1   :  { %2470 = vmatprep.subr.bf16.mxu0 %v3157_v1  ;;  %v3319_v28 = vpack.c.bf16 %v242_v23, %v239_v20 }
  0xc4   :  { %2472 = vmatpush3.bf16.msra.mxu0 %v2471_v26  ;;  %v246_v26 = vld [vmem:[#allocation8 + $0xf8] sm:$0xff] }
  0xc5   :  { %2473 = vmatprep.subr.bf16.mxu0 %v3157_v1  ;;  %v3325_v31 = vpack.c.bf16 %v249_v27, %v246_v26 }
  0xc8   :  { %2475 = vmatpush3.bf16.msra.mxu0 %v2474_v29  ;;  %v245_v29 = vld [vmem:[#allocation8 + $0xf0] sm:$0xff] }
  0xc9   :  { %2476 = vmatprep.subr.bf16.mxu0 %v3157_v1 }
  0xcc   :  { %2478 = vmatpush3.bf16.msra.mxu0 %v2477_v32  ;;  %v248_v32 = vld [vmem:[#allocation8 + $0x108] sm:$0xff] }
  0xcd   :  { %2479 = vmatprep.subr.bf16.mxu0 %v3157_v1  ;;  %v3329_v37 = vpack.c.bf16 %v248_v32, %v245_v29 }
  0xd0   :  { %2481 = vmatpush3.bf16.msra.mxu0 %v2480_v35  ;;  %v252_v35 = vld [vmem:[#allocation8 + $0x128] sm:$0xff] }
  0xd1   :  { %2482 = vmatprep.subr.bf16.mxu0 %v3157_v1  ;;  %v3335_v40 = vpack.c.bf16 %v255_v36, %v252_v35  ;;  %v3417_v36 = vld [vmem:[%s3732_s5] sm:$0x1]  ;;  %s3161_s5 = smov [#allocation10]  }
  0xd2   :  { %s1856_s25 = sshll.u32 %s3161_s5, 4  ;;  %s1857_s25 = int_to_ptr.vmem [resolvable:$true] %s1856_s25 }
  0xd3   :  { %s3097_s29 = scalar_lea.vmem %s1857_s25, 16  ;;  %s3101_s2 = scalar_lea.vmem %s1857_s25, 32 }
  0xd4   :  { %2484 = vmatpush3.bf16.msra.mxu0 %v2483_v38  ;;  %v251_v38 = vld [vmem:[#allocation8 + $0x120] sm:$0xff]  ;;  %p3098_p10 = scmp.ne.s32.totalorder %s1857_s25, %s3097_s29  ;;  %p3102_p11 = scmp.lt.s32.totalorder %s1857_s25, %s1857_s25 }
  0xd5   :  { %2485 = vmatprep.subr.bf16.mxu0 %v3157_v1  ;;  %p3103_p12 = scmp.lt.s32.totalorder %s3101_s2, %s3097_s29 }
  0xd7   :  { %p3104_p13 = por %p3103_p12, %p3102_p11 }
  0xd8   :  { %2487 = vmatpush3.bf16.msra.mxu0 %v2486_v41  ;;  %v254_v41 = vld [vmem:[#allocation8 + $0x138] sm:$0xff] }
  0xd9   :  { %2520 = vmatprep.subr.bf16.mxu0 %v3157_v1  ;;  %v3339_v47 = vpack.c.bf16 %v254_v41, %v251_v38  ;;  %p3105_p0 = pnand %p3104_p13, %p3098_p10 }
 0x18e   :  { %v162_v58 = vpop.f32.mrb[0].mxu0 }
 0x18f   :  { %v2092_v61 = vpop.f32.mrb[1].mxu0  ;;  %347 = vmatmul.mubr.f32.vlgmr.msra.gmra.mrb[0].mxu1 %v162_v58  ;;  %2126 = vmatmul.mubr.f32.vlgmr.msra.gmra.mrb[2].mxu0 %v162_v58  ;;  %v3352_v58 = vpack.c.bf16 %v262_v56, %v259_v55 }
 0x190   :  { %2491 = vmatpush1.bf16.msra.mxu1 %v3279_v51  ;;  %2522 = vmatpush3.bf16.msra.mxu0 %v3281_v53  ;;  %v269_v61 = vsub.s32 0, %v268_v60 }
 0x191   :  { %2493 = vmatprep.subr.bf16.mxu1 %v3283_v54  ;;  %2523 = vmatprep.subr.bf16.mxu0 %v3157_v1 }
 0x192   :  { %488 = vmatprep.mubr.f32.mxu1 %v3159_v8  ;;  %2160 = vmatprep.mubr.msk.f32.mxu0 %vm3158_vm0, %v3159_v8  ;;  %v270_v5 = vrot.slane %v263_v3, %v269_v61 }
 0x194   :  { %2495 = vmatpush1.bf16.msra.mxu1 %v3286_v62  ;;  %2525 = vmatpush3.bf16.msra.mxu0 %v3289_v0 }
 0x195   :  { %2497 = vmatprep.subr.bf16.mxu1 %v3292_v2  ;;  %2526 = vmatprep.subr.bf16.mxu0 %v3157_v1 }
 0x198   :  { %2499 = vmatpush1.bf16.msra.mxu1 %v3299_v9  ;;  %2528 = vmatpush3.bf16.msra.mxu0 %v3302_v11 }
 0x199   :  { %2501 = vmatprep.subr.bf16.mxu1 %v3305_v12  ;;  %2529 = vmatprep.subr.bf16.mxu0 %v3157_v1 }
 0x19c   :  { %2503 = vmatpush1.bf16.msra.mxu1 %v3309_v19  ;;  %2531 = vmatpush3.bf16.msra.mxu0 %v3312_v21 }
 0x19d   :  { %2505 = vmatprep.subr.bf16.mxu1 %v3315_v22  ;;  %2532 = vmatprep.subr.bf16.mxu0 %v3157_v1 }
 0x1a0   :  { %2507 = vmatpush1.bf16.msra.mxu1 %v3319_v28  ;;  %2534 = vmatpush3.bf16.msra.mxu0 %v3322_v30 }
 0x1a1   :  { %2509 = vmatprep.subr.bf16.mxu1 %v3325_v31  ;;  %2535 = vmatprep.subr.bf16.mxu0 %v3157_v1 }
 0x1a4   :  { %2511 = vmatpush1.bf16.msra.mxu1 %v3329_v37  ;;  %2537 = vmatpush3.bf16.msra.mxu0 %v3332_v39 }
 0x1a5   :  { %2513 = vmatprep.subr.bf16.mxu1 %v3335_v40  ;;  %2538 = vmatprep.subr.bf16.mxu0 %v3157_v1 }
 0x1a8   :  { %2515 = vmatpush1.bf16.msra.mxu1 %v3339_v47  ;;  %2540 = vmatpush3.bf16.msra.mxu0 %v3342_v49 }
 0x1a9   :  { %2517 = vmatprep.subr.bf16.mxu1 %v3345_v50  ;;  %2541 = vmatprep.subr.bf16.mxu0 %v3157_v1 }
 0x1ac   :  { %2519 = vmatpush1.bf16.msra.mxu1 %v3349_v57  ;;  %2543 = vmatpush3.bf16.msra.mxu0 %v3352_v58 }
 0x1ad   :  { %2545 = vmatprep.subr.bf16.mxu1 %v3276_v44  ;;  %2576 = vmatprep.subr.bf16.mxu0 %v3157_v1 }
 0x1af   :  { %489 = vmatmul.mubr.f32.vlgmr.msra.gmra.mrb[2].mxu1 %v3360_v59  ;;  %2161 = vmatmul.mubr.f32.vlgmr.msra.gmra.mrb[4].mxu0 %v3360_v59 }
 0x1b0   :  { %2547 = vmatpush1.bf16.msra.mxu1 %v3279_v51  ;;  %2578 = vmatpush3.bf16.msra.mxu0 %v3281_v53 }
 0x1b1   :  { %2549 = vmatprep.subr.bf16.mxu1 %v3283_v54  ;;  %2579 = vmatprep.subr.bf16.mxu0 %v3157_v1 }
 0x1b2   :  { %651 = vmatprep.mubr.f32.mxu1 %v3159_v8  ;;  %2195 = vmatprep.mubr.msk.f32.mxu0 %vm3158_vm0, %v3159_v8 }
 0x1b4   :  { %2551 = vmatpush1.bf16.msra.mxu1 %v3286_v62  ;;  %2581 = vmatpush3.bf16.msra.mxu0 %v3289_v0 }
 0x1b5   :  { %2553 = vmatprep.subr.bf16.mxu1 %v3292_v2  ;;  %2582 = vmatprep.subr.bf16.mxu0 %v3157_v1 }
 0x1b8   :  { %2555 = vmatpush1.bf16.msra.mxu1 %v3299_v9  ;;  %2584 = vmatpush3.bf16.msra.mxu0 %v3302_v11 }
 0x1b9   :  { %2557 = vmatprep.subr.bf16.mxu1 %v3305_v12  ;;  %2585 = vmatprep.subr.bf16.mxu0 %v3157_v1 }
 0x1bc   :  { %2559 = vmatpush1.bf16.msra.mxu1 %v3309_v19  ;;  %2587 = vmatpush3.bf16.msra.mxu0 %v3312_v21 }
 0x1bd   :  { %2561 = vmatprep.subr.bf16.mxu1 %v3315_v22  ;;  %2588 = vmatprep.subr.bf16.mxu0 %v3157_v1 }
 0x1c0   :  { %2563 = vmatpush1.bf16.msra.mxu1 %v3319_v28  ;;  %2590 = vmatpush3.bf16.msra.mxu0 %v3322_v30 }
 0x1c1   :  { %2565 = vmatprep.subr.bf16.mxu1 %v3325_v31  ;;  %2591 = vmatprep.subr.bf16.mxu0 %v3157_v1 }
 0x1c4   :  { %2567 = vmatpush1.bf16.msra.mxu1 %v3329_v37  ;;  %2593 = vmatpush3.bf16.msra.mxu0 %v3332_v39 }
 0x1c5   :  { %2569 = vmatprep.subr.bf16.mxu1 %v3335_v40  ;;  %2594 = vmatprep.subr.bf16.mxu0 %v3157_v1 }
 0x1c8   :  { %2571 = vmatpush1.bf16.msra.mxu1 %v3339_v47  ;;  %2596 = vmatpush3.bf16.msra.mxu0 %v3342_v49 }
 0x1c9   :  { %2573 = vmatprep.subr.bf16.mxu1 %v3345_v50  ;;  %2597 = vmatprep.subr.bf16.mxu0 %v3157_v1 }
 0x1cc   :  { %2575 = vmatpush1.bf16.msra.mxu1 %v3349_v57  ;;  %2599 = vmatpush3.bf16.msra.mxu0 %v3352_v58 }
 0x1cd   :  { %2601 = vmatprep.subr.bf16.mxu1 %v3276_v44  ;;  %2632 = vmatprep.subr.bf16.mxu0 %v3157_v1 }
 0x262   :  { %v348_v10 = vpop.f32.mrb[0].mxu1  ;;  %v419_v13 = vpop.f32.mrb[2].mxu0 }
 0x263   :  { %v3406_v15 = vadd.f32 %v348_v10, %v270_v5  ;;  %v3408_v16 = vadd.f32 %v419_v13, %v278_v6  ;;  %v350_v17 = vpop.f32.mrb[1].mxu1  ;;  %v2127_v18 = vpop.f32.mrb[3].mxu0 }
 0x264   :  { %v3410_v20 = vadd.f32 %v350_v17, %v274_v7 }
 0x282   :  { %v490_v14 = vpop.f32.mrb[2].mxu1  ;;  %v561_v23 = vpop.f32.mrb[4].mxu0 }
 0x283   :  { %v565_v24 = vadd.f32 %v490_v14, %v3406_v15  ;;  %v492_v25 = vpop.f32.mrb[3].mxu1  ;;  %v2162_v26 = vpop.f32.mrb[5].mxu0  ;;  %v579_v41 = vadd.f32 %v561_v23, %v3417_v36 }
 0x284   :  { %v572_v29 = vadd.f32 %v492_v25, %v3410_v20 }
 0x285   :  { %v1872_v27 = vmul.f32 -1.442695, %v565_v24 }
 0x286   :  { %v1873_v32 = vmul.f32 -1.442695, %v572_v29 }
 0x287   :  { %2951 = vpow2.f32 %v1872_v27 }
 0x288   :  { %2953 = vpow2.f32 %v1873_v32 }
 0x291   :  { %v2952_v33 = vpop.eup %2951 }
 0x292   :  { %v569_v34 = vadd.f32 1.0, %v2952_v33  ;;  %v2954_v35 = vpop.eup %2953 }
 0x293   :  { %v576_v38 = vadd.f32 1.0, %v2954_v35 }
 0x294   :  { %2955 = vrcp.f32 %v569_v34 }
 0x295   :  { %2957 = vrcp.f32 %v576_v38 }
 0x29e   :  { %v2956_v42 = vpop.eup %2955 }
 0x29f   :  { %v580_v43 = vmul.f32 %v2956_v42, %v579_v41  ;;  %v2958_v46 = vpop.eup %2957 }
 0x2a0   :  { %v583_v48 = vsub.f32 1.0, %v2958_v46  ;;  %v585_v56 = vmul.f32 %v2958_v46, %v3360_v59 }
 0x2a1   :  { %v581_v45 = vadd.f32 %v580_v43, %v3408_v16 }
 0x2a3   :  { %2959 = vtanh.f32 %v581_v45 }
 0x2ad   :  { %v2960_v52 = vpop.eup %2959 }
 0x2ae   :  { %v584_v55 = vmul.f32 %v2960_v52, %v583_v48 }
 0x2b0   :  { %v3422_v60 = vadd.f32 %v585_v56, %v584_v55 }
 0x2b2   :  { %652 = vmatmul.mubr.f32.vlgmr.msra.gmra.mrb[4].mxu1 %v3422_v60  ;;  %2196 = vmatmul.mubr.f32.vlgmr.msra.gmra.mrb[6].mxu0 %v3422_v60  ;;  %v758_v33 = vrot.slane %v3422_v60, 7 }
 0x2b3   :  { %2603 = vmatpush1.bf16.msra.mxu1 %v3279_v51  ;;  %2634 = vmatpush3.bf16.msra.mxu0 %v3281_v53 }
 0x2b4   :  { %2605 = vmatprep.subr.bf16.mxu1 %v3283_v54  ;;  %2635 = vmatprep.subr.bf16.mxu0 %v3157_v1 }
 0x2b5   :  { %829 = vmatprep.mubr.f32.mxu1 %v3159_v8  ;;  %2230 = vmatprep.mubr.msk.f32.mxu0 %vm3158_vm0, %v3159_v8 }
 0x2b7   :  { %2607 = vmatpush1.bf16.msra.mxu1 %v3286_v62  ;;  %2637 = vmatpush3.bf16.msra.mxu0 %v3289_v0 }
 0x2b8   :  { %2609 = vmatprep.subr.bf16.mxu1 %v3292_v2  ;;  %2638 = vmatprep.subr.bf16.mxu0 %v3157_v1 }
 0x2bb   :  { %2611 = vmatpush1.bf16.msra.mxu1 %v3299_v9  ;;  %2640 = vmatpush3.bf16.msra.mxu0 %v3302_v11 }
 0x2bc   :  { %2613 = vmatprep.subr.bf16.mxu1 %v3305_v12  ;;  %2641 = vmatprep.subr.bf16.mxu0 %v3157_v1 }
 0x2bf   :  { %2615 = vmatpush1.bf16.msra.mxu1 %v3309_v19  ;;  %2643 = vmatpush3.bf16.msra.mxu0 %v3312_v21 }
 0x2c0   :  { %2617 = vmatprep.subr.bf16.mxu1 %v3315_v22  ;;  %2644 = vmatprep.subr.bf16.mxu0 %v3157_v1 }
 0x2c3   :  { %2619 = vmatpush1.bf16.msra.mxu1 %v3319_v28  ;;  %2646 = vmatpush3.bf16.msra.mxu0 %v3322_v30 }
 0x2c4   :  { %2621 = vmatprep.subr.bf16.mxu1 %v3325_v31  ;;  %2647 = vmatprep.subr.bf16.mxu0 %v3157_v1 }
 0x2c7   :  { %2623 = vmatpush1.bf16.msra.mxu1 %v3329_v37  ;;  %2649 = vmatpush3.bf16.msra.mxu0 %v3332_v39 }
 0x2c8   :  { %2625 = vmatprep.subr.bf16.mxu1 %v3335_v40  ;;  %2650 = vmatprep.subr.bf16.mxu0 %v3157_v1 }
 0x2cb   :  { %2627 = vmatpush1.bf16.msra.mxu1 %v3339_v47  ;;  %2652 = vmatpush3.bf16.msra.mxu0 %v3342_v49 }
 0x2cc   :  { %2629 = vmatprep.subr.bf16.mxu1 %v3345_v50  ;;  %2653 = vmatprep.subr.bf16.mxu0 %v3157_v1 }
 0x2cf   :  { %2631 = vmatpush1.bf16.msra.mxu1 %v3349_v57  ;;  %2655 = vmatpush3.bf16.msra.mxu0 %v3352_v58 }
 0x2d0   :  { %2657 = vmatprep.subr.bf16.mxu1 %v3276_v44  ;;  %2688 = vmatprep.subr.bf16.mxu0 %v3157_v1 }
 0x385   :  { %v653_v59 = vpop.f32.mrb[4].mxu1  ;;  %v724_v61 = vpop.f32.mrb[6].mxu0 }
 0x386   :  { %v729_v63 = vrot.slane %v653_v59, 7  ;;  %v655_v3 = vpop.f32.mrb[5].mxu1  ;;  %v2197_v4 = vpop.f32.mrb[7].mxu0  ;;  %v748_v23 = vadd.f32 %v724_v61, %v3417_v36 }
 0x387   :  { %v739_v5 = vrot.slane %v655_v3, 7 }
 0x388   :  { %v731_v6 = vadd.f32 %v729_v63, %v3406_v15  ;;  %v750_v25 = vrot.slane %v748_v23, 7 }
 0x389   :  { %v741_v10 = vadd.f32 %v739_v5, %v3410_v20 }
 0x38a   :  { %v1874_v7 = vmul.f32 -1.442695, %v731_v6 }
 0x38b   :  { %v1875_v13 = vmul.f32 -1.442695, %v741_v10 }
 0x38c   :  { %2961 = vpow2.f32 %v1874_v7 }
 0x38d   :  { %2963 = vpow2.f32 %v1875_v13 }
 0x396   :  { %v2962_v17 = vpop.eup %2961 }
 0x397   :  { %v735_v18 = vadd.f32 1.0, %v2962_v17  ;;  %v2964_v14 = vpop.eup %2963 }
 0x398   :  { %v745_v24 = vadd.f32 1.0, %v2964_v14 }
 0x399   :  { %2965 = vrcp.f32 %v735_v18 }
 0x39a   :  { %2967 = vrcp.f32 %v745_v24 }
 0x3a3   :  { %v2966_v26 = vpop.eup %2965 }
 0x3a4   :  { %v752_v27 = vmul.f32 %v2966_v26, %v750_v25  ;;  %v2968_v32 = vpop.eup %2967 }
 0x3a5   :  { %v755_v34 = vsub.f32 1.0, %v2968_v32  ;;  %v760_v41 = vmul.f32 %v2968_v32, %v758_v33 }
 0x3a6   :  { %v753_v29 = vadd.f32 %v752_v27, %v3408_v16 }
 0x3a8   :  { %2969 = vtanh.f32 %v753_v29 }
 0x3b2   :  { %v2970_v35 = vpop.eup %2969 }
 0x3b3   :  { %v756_v38 = vmul.f32 %v2970_v35, %v755_v34 }
 0x3b5   :  { %v3466_v42 = vadd.f32 %v760_v41, %v756_v38 }
 0x3b7   :  { %v763_v43 = vrot.slane %v3466_v42, 1  ;;  %v935_v18 = vrot.slane %v3466_v42, 7  ;;  %v1826_v33 = vsel %vm1825_vm2, %v3422_v60, %v3466_v42 }
 0x3b9   :  { %830 = vmatmul.mubr.f32.vlgmr.msra.gmra.mrb[6].mxu1 %v763_v43  ;;  %2231 = vmatmul.mubr.f32.vlgmr.msra.gmra.mrb[8].mxu0 %v763_v43 }
 0x3ba   :  { %2659 = vmatpush1.bf16.msra.mxu1 %v3279_v51  ;;  %2690 = vmatpush3.bf16.msra.mxu0 %v3281_v53 }
 0x3bb   :  { %2661 = vmatprep.subr.bf16.mxu1 %v3283_v54  ;;  %2691 = vmatprep.subr.bf16.mxu0 %v3157_v1 }
 0x3bc   :  { %1006 = vmatprep.mubr.f32.mxu1 %v3159_v8  ;;  %2265 = vmatprep.mubr.msk.f32.mxu0 %vm3158_vm0, %v3159_v8 }
 0x3be   :  { %2663 = vmatpush1.bf16.msra.mxu1 %v3286_v62  ;;  %2693 = vmatpush3.bf16.msra.mxu0 %v3289_v0 }
 0x3bf   :  { %2665 = vmatprep.subr.bf16.mxu1 %v3292_v2  ;;  %2694 = vmatprep.subr.bf16.mxu0 %v3157_v1 }
 0x3c2   :  { %2667 = vmatpush1.bf16.msra.mxu1 %v3299_v9  ;;  %2696 = vmatpush3.bf16.msra.mxu0 %v3302_v11 }
 0x3c3   :  { %2669 = vmatprep.subr.bf16.mxu1 %v3305_v12  ;;  %2697 = vmatprep.subr.bf16.mxu0 %v3157_v1 }
 0x3c6   :  { %2671 = vmatpush1.bf16.msra.mxu1 %v3309_v19  ;;  %2699 = vmatpush3.bf16.msra.mxu0 %v3312_v21 }
 0x3c7   :  { %2673 = vmatprep.subr.bf16.mxu1 %v3315_v22  ;;  %2700 = vmatprep.subr.bf16.mxu0 %v3157_v1 }
 0x3ca   :  { %2675 = vmatpush1.bf16.msra.mxu1 %v3319_v28  ;;  %2702 = vmatpush3.bf16.msra.mxu0 %v3322_v30 }
 0x3cb   :  { %2677 = vmatprep.subr.bf16.mxu1 %v3325_v31  ;;  %2703 = vmatprep.subr.bf16.mxu0 %v3157_v1 }
 0x3ce   :  { %2679 = vmatpush1.bf16.msra.mxu1 %v3329_v37  ;;  %2705 = vmatpush3.bf16.msra.mxu0 %v3332_v39 }
 0x3cf   :  { %2681 = vmatprep.subr.bf16.mxu1 %v3335_v40  ;;  %2706 = vmatprep.subr.bf16.mxu0 %v3157_v1 }
 0x3d2   :  { %2683 = vmatpush1.bf16.msra.mxu1 %v3339_v47  ;;  %2708 = vmatpush3.bf16.msra.mxu0 %v3342_v49 }
 0x3d3   :  { %2685 = vmatprep.subr.bf16.mxu1 %v3345_v50  ;;  %2709 = vmatprep.subr.bf16.mxu0 %v3157_v1 }
 0x3d6   :  { %2687 = vmatpush1.bf16.msra.mxu1 %v3349_v57  ;;  %2711 = vmatpush3.bf16.msra.mxu0 %v3352_v58 }
 0x3d7   :  { %2713 = vmatprep.subr.bf16.mxu1 %v3276_v44  ;;  %2744 = vmatprep.subr.bf16.mxu0 %v3157_v1 }
 0x48c   :  { %v831_v45 = vpop.f32.mrb[6].mxu1  ;;  %v902_v46 = vpop.f32.mrb[8].mxu0 }
 0x48d   :  { %v907_v48 = vrot.slane %v831_v45, 6  ;;  %v833_v52 = vpop.f32.mrb[7].mxu1  ;;  %v2232_v55 = vpop.f32.mrb[9].mxu0  ;;  %v926_v10 = vadd.f32 %v902_v46, %v3417_v36 }
 0x48e   :  { %v917_v56 = vrot.slane %v833_v52, 6 }
 0x48f   :  { %v909_v59 = vadd.f32 %v907_v48, %v3406_v15  ;;  %v928_v13 = vrot.slane %v926_v10, 6 }
 0x490   :  { %v919_v61 = vadd.f32 %v917_v56, %v3410_v20 }
 0x491   :  { %v1876_v63 = vmul.f32 -1.442695, %v909_v59 }
 0x492   :  { %v1877_v3 = vmul.f32 -1.442695, %v919_v61 }
 0x493   :  { %2971 = vpow2.f32 %v1876_v63 }
 0x494   :  { %2973 = vpow2.f32 %v1877_v3 }
 0x49d   :  { %v2972_v4 = vpop.eup %2971 }
 0x49e   :  { %v2974_v5 = vpop.eup %2973  ;;  %v913_v6 = vadd.f32 1.0, %v2972_v4 }
 0x49f   :  { %v923_v7 = vadd.f32 1.0, %v2974_v5 }
 0x4a0   :  { %2975 = vrcp.f32 %v913_v6 }
 0x4a1   :  { %2977 = vrcp.f32 %v923_v7 }
 0x4aa   :  { %v2976_v17 = vpop.eup %2975 }
 0x4ab   :  { %v2978_v14 = vpop.eup %2977  ;;  %v930_v23 = vmul.f32 %v2976_v17, %v928_v13 }
 0x4ac   :  { %v937_v24 = vmul.f32 %v2978_v14, %v935_v18  ;;  %v933_v26 = vsub.f32 1.0, %v2978_v14 }
 0x4ad   :  { %v931_v25 = vadd.f32 %v930_v23, %v3408_v16 }
 0x4af   :  { %2979 = vtanh.f32 %v931_v25 }
 0x4b9   :  { %v2980_v27 = vpop.eup %2979 }
 0x4ba   :  { %v934_v29 = vmul.f32 %v2980_v27, %v933_v26 }
 0x4bc   :  { %v3509_v32 = vadd.f32 %v937_v24, %v934_v29 }
 0x4be   :  { %v940_v34 = vrot.slane %v3509_v32, 2  ;;  %v3515_v35 = vsel %vm1827_vm3, %v1826_v33, %v3509_v32  ;;  %v1112_v6 = vrot.slane %v3509_v32, 7 }
 0x4c0   :  { %1007 = vmatmul.mubr.f32.vlgmr.msra.gmra.mrb[8].mxu1 %v940_v34  ;;  %2266 = vmatmul.mubr.f32.vlgmr.msra.gmra.mrb[10].mxu0 %v940_v34 }
 0x4c1   :  { %2715 = vmatpush1.bf16.msra.mxu1 %v3279_v51  ;;  %2746 = vmatpush3.bf16.msra.mxu0 %v3281_v53 }
 0x4c2   :  { %2717 = vmatprep.subr.bf16.mxu1 %v3283_v54  ;;  %2747 = vmatprep.subr.bf16.mxu0 %v3157_v1 }
 0x4c3   :  { %1183 = vmatprep.mubr.f32.mxu1 %v3159_v8  ;;  %2300 = vmatprep.mubr.msk.f32.mxu0 %vm3158_vm0, %v3159_v8 }
 0x4c5   :  { %2719 = vmatpush1.bf16.msra.mxu1 %v3286_v62  ;;  %2749 = vmatpush3.bf16.msra.mxu0 %v3289_v0 }
 0x4c6   :  { %2721 = vmatprep.subr.bf16.mxu1 %v3292_v2  ;;  %2750 = vmatprep.subr.bf16.mxu0 %v3157_v1 }
 0x4c9   :  { %2723 = vmatpush1.bf16.msra.mxu1 %v3299_v9  ;;  %2752 = vmatpush3.bf16.msra.mxu0 %v3302_v11 }
 0x4ca   :  { %2725 = vmatprep.subr.bf16.mxu1 %v3305_v12  ;;  %2753 = vmatprep.subr.bf16.mxu0 %v3157_v1 }
 0x4cd   :  { %2727 = vmatpush1.bf16.msra.mxu1 %v3309_v19  ;;  %2755 = vmatpush3.bf16.msra.mxu0 %v3312_v21 }
 0x4ce   :  { %2729 = vmatprep.subr.bf16.mxu1 %v3315_v22  ;;  %2756 = vmatprep.subr.bf16.mxu0 %v3157_v1 }
 0x4d1   :  { %2731 = vmatpush1.bf16.msra.mxu1 %v3319_v28  ;;  %2758 = vmatpush3.bf16.msra.mxu0 %v3322_v30 }
 0x4d2   :  { %2733 = vmatprep.subr.bf16.mxu1 %v3325_v31  ;;  %2759 = vmatprep.subr.bf16.mxu0 %v3157_v1 }
 0x4d5   :  { %2735 = vmatpush1.bf16.msra.mxu1 %v3329_v37  ;;  %2761 = vmatpush3.bf16.msra.mxu0 %v3332_v39 }
 0x4d6   :  { %2737 = vmatprep.subr.bf16.mxu1 %v3335_v40  ;;  %2762 = vmatprep.subr.bf16.mxu0 %v3157_v1 }
 0x4d9   :  { %2739 = vmatpush1.bf16.msra.mxu1 %v3339_v47  ;;  %2764 = vmatpush3.bf16.msra.mxu0 %v3342_v49 }
 0x4da   :  { %2741 = vmatprep.subr.bf16.mxu1 %v3345_v50  ;;  %2765 = vmatprep.subr.bf16.mxu0 %v3157_v1 }
 0x4dd   :  { %2743 = vmatpush1.bf16.msra.mxu1 %v3349_v57  ;;  %2767 = vmatpush3.bf16.msra.mxu0 %v3352_v58 }
 0x4de   :  { %2769 = vmatprep.subr.bf16.mxu1 %v3276_v44  ;;  %2800 = vmatprep.subr.bf16.mxu0 %v3157_v1 }
 0x593   :  { %v1008_v60 = vpop.f32.mrb[8].mxu1  ;;  %v1079_v38 = vpop.f32.mrb[10].mxu0 }
 0x594   :  { %v1084_v41 = vrot.slane %v1008_v60, 5  ;;  %v1010_v42 = vpop.f32.mrb[9].mxu1  ;;  %v2267_v43 = vpop.f32.mrb[11].mxu0  ;;  %v1103_v3 = vadd.f32 %v1079_v38, %v3417_v36 }
 0x595   :  { %v1094_v45 = vrot.slane %v1010_v42, 5 }
 0x596   :  { %v1086_v46 = vadd.f32 %v1084_v41, %v3406_v15  ;;  %v1105_v4 = vrot.slane %v1103_v3, 5 }
 0x597   :  { %v1096_v48 = vadd.f32 %v1094_v45, %v3410_v20 }
 0x598   :  { %v1878_v52 = vmul.f32 -1.442695, %v1086_v46 }
 0x599   :  { %v1879_v55 = vmul.f32 -1.442695, %v1096_v48 }
 0x59a   :  { %2981 = vpow2.f32 %v1878_v52 }
 0x59b   :  { %2983 = vpow2.f32 %v1879_v55 }
 0x5a4   :  { %v2982_v56 = vpop.eup %2981 }
 0x5a5   :  { %v2984_v59 = vpop.eup %2983  ;;  %v1090_v61 = vadd.f32 1.0, %v2982_v56 }
 0x5a6   :  { %v1100_v63 = vadd.f32 1.0, %v2984_v59 }
 0x5a7   :  { %2985 = vrcp.f32 %v1090_v61 }
 0x5a8   :  { %2987 = vrcp.f32 %v1100_v63 }
 0x5b1   :  { %v2986_v5 = vpop.eup %2985 }
 0x5b2   :  { %v2988_v7 = vpop.eup %2987  ;;  %v1107_v10 = vmul.f32 %v2986_v5, %v1105_v4 }
 0x5b3   :  { %v1114_v13 = vmul.f32 %v2988_v7, %v1112_v6  ;;  %v1110_v18 = vsub.f32 1.0, %v2988_v7 }
 0x5b4   :  { %v1108_v17 = vadd.f32 %v1107_v10, %v3408_v16 }
 0x5b6   :  { %2989 = vtanh.f32 %v1108_v17 }
 0x5c0   :  { %v2990_v14 = vpop.eup %2989 }
 0x5c1   :  { %v1111_v23 = vmul.f32 %v2990_v14, %v1110_v18 }
 0x5c3   :  { %v3557_v24 = vadd.f32 %v1114_v13, %v1111_v23 }
 0x5c5   :  { %v1117_v25 = vrot.slane %v3557_v24, 3  ;;  %v3562_v26 = vsel %vm1829_vm4, %v3515_v35, %v3557_v24  ;;  %v1289_v59 = vrot.slane %v3557_v24, 7 }
 0x5c7   :  { %1184 = vmatmul.mubr.f32.vlgmr.msra.gmra.mrb[10].mxu1 %v1117_v25  ;;  %2301 = vmatmul.mubr.f32.vlgmr.msra.gmra.mrb[12].mxu0 %v1117_v25 }
 0x5c8   :  { %2771 = vmatpush1.bf16.msra.mxu1 %v3279_v51  ;;  %2802 = vmatpush3.bf16.msra.mxu0 %v3281_v53 }
 0x5c9   :  { %2773 = vmatprep.subr.bf16.mxu1 %v3283_v54  ;;  %2803 = vmatprep.subr.bf16.mxu0 %v3157_v1 }
 0x5ca   :  { %1360 = vmatprep.mubr.f32.mxu1 %v3159_v8  ;;  %2335 = vmatprep.mubr.msk.f32.mxu0 %vm3158_vm0, %v3159_v8 }
 0x5cc   :  { %2775 = vmatpush1.bf16.msra.mxu1 %v3286_v62  ;;  %2805 = vmatpush3.bf16.msra.mxu0 %v3289_v0 }
 0x5cd   :  { %2777 = vmatprep.subr.bf16.mxu1 %v3292_v2  ;;  %2806 = vmatprep.subr.bf16.mxu0 %v3157_v1 }
 0x5d0   :  { %2779 = vmatpush1.bf16.msra.mxu1 %v3299_v9  ;;  %2808 = vmatpush3.bf16.msra.mxu0 %v3302_v11 }
 0x5d1   :  { %2781 = vmatprep.subr.bf16.mxu1 %v3305_v12  ;;  %2809 = vmatprep.subr.bf16.mxu0 %v3157_v1 }
 0x5d4   :  { %2783 = vmatpush1.bf16.msra.mxu1 %v3309_v19  ;;  %2811 = vmatpush3.bf16.msra.mxu0 %v3312_v21 }
 0x5d5   :  { %2785 = vmatprep.subr.bf16.mxu1 %v3315_v22  ;;  %2812 = vmatprep.subr.bf16.mxu0 %v3157_v1 }
 0x5d8   :  { %2787 = vmatpush1.bf16.msra.mxu1 %v3319_v28  ;;  %2814 = vmatpush3.bf16.msra.mxu0 %v3322_v30 }
 0x5d9   :  { %2789 = vmatprep.subr.bf16.mxu1 %v3325_v31  ;;  %2815 = vmatprep.subr.bf16.mxu0 %v3157_v1 }
 0x5dc   :  { %2791 = vmatpush1.bf16.msra.mxu1 %v3329_v37  ;;  %2817 = vmatpush3.bf16.msra.mxu0 %v3332_v39 }
 0x5dd   :  { %2793 = vmatprep.subr.bf16.mxu1 %v3335_v40  ;;  %2818 = vmatprep.subr.bf16.mxu0 %v3157_v1 }
 0x5e0   :  { %2795 = vmatpush1.bf16.msra.mxu1 %v3339_v47  ;;  %2820 = vmatpush3.bf16.msra.mxu0 %v3342_v49 }
 0x5e1   :  { %2797 = vmatprep.subr.bf16.mxu1 %v3345_v50  ;;  %2821 = vmatprep.subr.bf16.mxu0 %v3157_v1 }
 0x5e4   :  { %2799 = vmatpush1.bf16.msra.mxu1 %v3349_v57  ;;  %2823 = vmatpush3.bf16.msra.mxu0 %v3352_v58 }
 0x5e5   :  { %2825 = vmatprep.subr.bf16.mxu1 %v3276_v44  ;;  %2856 = vmatprep.subr.bf16.mxu0 %v3157_v1 }
 0x69a   :  { %v1185_v27 = vpop.f32.mrb[10].mxu1  ;;  %v1256_v29 = vpop.f32.mrb[12].mxu0 }
 0x69b   :  { %v1261_v32 = vrot.slane %v1185_v27, 4  ;;  %v1187_v33 = vpop.f32.mrb[11].mxu1  ;;  %v2302_v34 = vpop.f32.mrb[13].mxu0  ;;  %v1280_v52 = vadd.f32 %v1256_v29, %v3417_v36 }
 0x69c   :  { %v1271_v35 = vrot.slane %v1187_v33, 4 }
 0x69d   :  { %v1263_v60 = vadd.f32 %v1261_v32, %v3406_v15  ;;  %v1282_v55 = vrot.slane %v1280_v52, 4 }
 0x69e   :  { %v1273_v38 = vadd.f32 %v1271_v35, %v3410_v20 }
 0x69f   :  { %v1880_v41 = vmul.f32 -1.442695, %v1263_v60 }
 0x6a0   :  { %v1881_v42 = vmul.f32 -1.442695, %v1273_v38 }
 0x6a1   :  { %2991 = vpow2.f32 %v1880_v41 }
 0x6a2   :  { %2993 = vpow2.f32 %v1881_v42 }
 0x6ab   :  { %v2992_v43 = vpop.eup %2991 }
 0x6ac   :  { %v2994_v45 = vpop.eup %2993  ;;  %v1267_v46 = vadd.f32 1.0, %v2992_v43 }
 0x6ad   :  { %v1277_v48 = vadd.f32 1.0, %v2994_v45 }
 0x6ae   :  { %2995 = vrcp.f32 %v1267_v46 }
 0x6af   :  { %2997 = vrcp.f32 %v1277_v48 }
 0x6b8   :  { %v2996_v56 = vpop.eup %2995 }
 0x6b9   :  { %v2998_v61 = vpop.eup %2997  ;;  %v1284_v63 = vmul.f32 %v2996_v56, %v1282_v55 }
 0x6ba   :  { %v1291_v3 = vmul.f32 %v2998_v61, %v1289_v59  ;;  %v1287_v5 = vsub.f32 1.0, %v2998_v61 }
 0x6bb   :  { %v1285_v4 = vadd.f32 %v1284_v63, %v3408_v16 }
 0x6bd   :  { %2999 = vtanh.f32 %v1285_v4 }
 0x6c7   :  { %v3000_v6 = vpop.eup %2999 }
 0x6c8   :  { %v1288_v7 = vmul.f32 %v3000_v6, %v1287_v5 }
 0x6ca   :  { %v3604_v10 = vadd.f32 %v1291_v3, %v1288_v7 }
 0x6cc   :  { %v1294_v13 = vrot.slane %v3604_v10, 4  ;;  %v3609_v17 = vsel %vm1831_vm5, %v3562_v26, %v3604_v10  ;;  %v1466_v43 = vrot.slane %v3604_v10, 7 }
 0x6ce   :  { %1361 = vmatmul.mubr.f32.vlgmr.msra.gmra.mrb[12].mxu1 %v1294_v13  ;;  %2336 = vmatmul.mubr.f32.vlgmr.msra.gmra.mrb[14].mxu0 %v1294_v13 }
 0x6cf   :  { %2827 = vmatpush1.bf16.msra.mxu1 %v3279_v51  ;;  %2858 = vmatpush3.bf16.msra.mxu0 %v3281_v53 }
 0x6d0   :  { %2829 = vmatprep.subr.bf16.mxu1 %v3283_v54  ;;  %2859 = vmatprep.subr.bf16.mxu0 %v3157_v1 }
 0x6d1   :  { %1537 = vmatprep.mubr.f32.mxu1 %v3159_v8  ;;  %2370 = vmatprep.mubr.msk.f32.mxu0 %vm3158_vm0, %v3159_v8 }
 0x6d3   :  { %2831 = vmatpush1.bf16.msra.mxu1 %v3286_v62  ;;  %2861 = vmatpush3.bf16.msra.mxu0 %v3289_v0 }
 0x6d4   :  { %2833 = vmatprep.subr.bf16.mxu1 %v3292_v2  ;;  %2862 = vmatprep.subr.bf16.mxu0 %v3157_v1 }
 0x6d7   :  { %2835 = vmatpush1.bf16.msra.mxu1 %v3299_v9  ;;  %2864 = vmatpush3.bf16.msra.mxu0 %v3302_v11 }
 0x6d8   :  { %2837 = vmatprep.subr.bf16.mxu1 %v3305_v12  ;;  %2865 = vmatprep.subr.bf16.mxu0 %v3157_v1 }
 0x6db   :  { %2839 = vmatpush1.bf16.msra.mxu1 %v3309_v19  ;;  %2867 = vmatpush3.bf16.msra.mxu0 %v3312_v21 }
 0x6dc   :  { %2841 = vmatprep.subr.bf16.mxu1 %v3315_v22  ;;  %2868 = vmatprep.subr.bf16.mxu0 %v3157_v1 }
 0x6df   :  { %2843 = vmatpush1.bf16.msra.mxu1 %v3319_v28  ;;  %2870 = vmatpush3.bf16.msra.mxu0 %v3322_v30 }
 0x6e0   :  { %2845 = vmatprep.subr.bf16.mxu1 %v3325_v31  ;;  %2871 = vmatprep.subr.bf16.mxu0 %v3157_v1 }
 0x6e3   :  { %2847 = vmatpush1.bf16.msra.mxu1 %v3329_v37  ;;  %2873 = vmatpush3.bf16.msra.mxu0 %v3332_v39 }
 0x6e4   :  { %2849 = vmatprep.subr.bf16.mxu1 %v3335_v40  ;;  %2874 = vmatprep.subr.bf16.mxu0 %v3157_v1 }
 0x6e7   :  { %2851 = vmatpush1.bf16.msra.mxu1 %v3339_v47  ;;  %2876 = vmatpush3.bf16.msra.mxu0 %v3342_v49 }
 0x6e8   :  { %2853 = vmatprep.subr.bf16.mxu1 %v3345_v50  ;;  %2877 = vmatprep.subr.bf16.mxu0 %v3157_v1 }
 0x6eb   :  { %2855 = vmatpush1.bf16.msra.mxu1 %v3349_v57  ;;  %2879 = vmatpush3.bf16.msra.mxu0 %v3352_v58 }
 0x6ec   :  { %2881 = vmatprep.subr.bf16.mxu1 %v3276_v44  ;;  %2912 = vmatprep.subr.bf16.mxu0 %v3157_v1 }
 0x7a1   :  { %v1362_v18 = vpop.f32.mrb[12].mxu1  ;;  %v1433_v14 = vpop.f32.mrb[14].mxu0 }
 0x7a2   :  { %v1438_v23 = vrot.slane %v1362_v18, 3  ;;  %v1364_v24 = vpop.f32.mrb[13].mxu1  ;;  %v2337_v25 = vpop.f32.mrb[15].mxu0  ;;  %v1457_v38 = vadd.f32 %v1433_v14, %v3417_v36 }
 0x7a3   :  { %v1448_v26 = vrot.slane %v1364_v24, 3 }
 0x7a4   :  { %v1440_v27 = vadd.f32 %v1438_v23, %v3406_v15  ;;  %v1459_v41 = vrot.slane %v1457_v38, 3 }
 0x7a5   :  { %v1450_v29 = vadd.f32 %v1448_v26, %v3410_v20 }
 0x7a6   :  { %v1882_v32 = vmul.f32 -1.442695, %v1440_v27 }
 0x7a7   :  { %v1883_v33 = vmul.f32 -1.442695, %v1450_v29 }
 0x7a8   :  { %3001 = vpow2.f32 %v1882_v32 }
 0x7a9   :  { %3003 = vpow2.f32 %v1883_v33 }
 0x7b2   :  { %v3002_v34 = vpop.eup %3001 }
 0x7b3   :  { %v3004_v35 = vpop.eup %3003  ;;  %v1444_v60 = vadd.f32 1.0, %v3002_v34 }
 0x7b4   :  { %v1454_v44 = vadd.f32 1.0, %v3004_v35 }
 0x7b5   :  { %3005 = vrcp.f32 %v1444_v60 }
 0x7b6   :  { %3007 = vrcp.f32 %v1454_v44 }
 0x7bf   :  { %v3006_v42 = vpop.eup %3005 }
 0x7c0   :  { %v3008_v45 = vpop.eup %3007  ;;  %v1461_v46 = vmul.f32 %v3006_v42, %v1459_v41 }
 0x7c1   :  { %v1468_v48 = vmul.f32 %v3008_v45, %v1466_v43  ;;  %v1464_v55 = vsub.f32 1.0, %v3008_v45 }
 0x7c2   :  { %v1462_v52 = vadd.f32 %v1461_v46, %v3408_v16 }
 0x7c4   :  { %3009 = vtanh.f32 %v1462_v52 }
 0x7ce   :  { %v3010_v56 = vpop.eup %3009 }
 0x7cf   :  { %v1465_v59 = vmul.f32 %v3010_v56, %v1464_v55 }
 0x7d1   :  { %v1469_v61 = vadd.f32 %v1468_v48, %v1465_v59 }
 0x7d3   :  { %v1471_v63 = vrot.slane %v1469_v61, 5  ;;  %v3652_v3 = vsel %vm1833_vm6, %v3609_v17, %v1469_v61 }
 0x7d5   :  { %1538 = vmatmul.mubr.f32.vlgmr.msra.gmra.mrb[14].mxu1 %v1471_v63  ;;  %2371 = vmatmul.mubr.f32.vlgmr.msra.gmra.mrb[16].mxu0 %v1471_v63 }
 0x7d6   :  { %2883 = vmatpush1.bf16.msra.mxu1 %v3279_v51  ;;  %2914 = vmatpush3.bf16.msra.mxu0 %v3281_v53 }
 0x7d7   :  { %2885 = vmatprep.subr.bf16.mxu1 %v3283_v54  ;;  %2915 = vmatprep.subr.bf16.mxu0 %v3157_v1 }
 0x7d8   :  { %1714 = vmatprep.mubr.f32.mxu1 %v3159_v8  ;;  %2405 = vmatprep.mubr.msk.f32.mxu0 %vm3158_vm0, %v3159_v8 }
 0x7da   :  { %2887 = vmatpush1.bf16.msra.mxu1 %v3286_v62  ;;  %2917 = vmatpush3.bf16.msra.mxu0 %v3289_v0 }
 0x7db   :  { %2889 = vmatprep.subr.bf16.mxu1 %v3292_v2  ;;  %2918 = vmatprep.subr.bf16.mxu0 %v3157_v1 }
 0x7de   :  { %2891 = vmatpush1.bf16.msra.mxu1 %v3299_v9  ;;  %2920 = vmatpush3.bf16.msra.mxu0 %v3302_v11 }
 0x7df   :  { %2893 = vmatprep.subr.bf16.mxu1 %v3305_v12  ;;  %2921 = vmatprep.subr.bf16.mxu0 %v3157_v1 }
 0x7e2   :  { %2895 = vmatpush1.bf16.msra.mxu1 %v3309_v19  ;;  %2923 = vmatpush3.bf16.msra.mxu0 %v3312_v21 }
 0x7e3   :  { %2897 = vmatprep.subr.bf16.mxu1 %v3315_v22  ;;  %2924 = vmatprep.subr.bf16.mxu0 %v3157_v1 }
 0x7e6   :  { %2899 = vmatpush1.bf16.msra.mxu1 %v3319_v28  ;;  %2926 = vmatpush3.bf16.msra.mxu0 %v3322_v30 }
 0x7e7   :  { %2901 = vmatprep.subr.bf16.mxu1 %v3325_v31  ;;  %2927 = vmatprep.subr.bf16.mxu0 %v3157_v1 }
 0x7ea   :  { %2903 = vmatpush1.bf16.msra.mxu1 %v3329_v37  ;;  %2929 = vmatpush3.bf16.msra.mxu0 %v3332_v39  ;;  %v1643_v37 = vrot.slane %v1469_v61, 7 }
 0x7eb   :  { %2905 = vmatprep.subr.bf16.mxu1 %v3335_v40  ;;  %2930 = vmatprep.subr.bf16.mxu0 %v3157_v1 }
 0x7ee   :  { %2907 = vmatpush1.bf16.msra.mxu1 %v3339_v47  ;;  %2932 = vmatpush3.bf16.msra.mxu0 %v3342_v49 }
 0x7ef   :  { %2909 = vmatprep.subr.bf16.mxu1 %v3345_v50  ;;  %2933 = vmatprep.subr.bf16.mxu0 %v3157_v1 }
 0x7f2   :  { %2911 = vmatpush1.bf16.msra.mxu1 %v3349_v57  ;;  %2935 = vmatpush3.bf16.msra.mxu0 %v3352_v58 }
 0x8a8   :  { %v1539_v8 = vpop.f32.mrb[14].mxu1  ;;  %v1610_v51 = vpop.f32.mrb[16].mxu0 }
 0x8a9   :  { %v1615_v53 = vrot.slane %v1539_v8, 2  ;;  %v1541_v54 = vpop.f32.mrb[15].mxu1  ;;  %v2372_v62 = vpop.f32.mrb[17].mxu0  ;;  %v1634_v28 = vadd.f32 %v1610_v51, %v3417_v36 }
 0x8aa   :  { %v1625_v0 = vrot.slane %v1541_v54, 2 }
 0x8ab   :  { %v1617_v2 = vadd.f32 %v1615_v53, %v3406_v15  ;;  %v1636_v30 = vrot.slane %v1634_v28, 2 }
 0x8ac   :  { %v1627_v9 = vadd.f32 %v1625_v0, %v3410_v20 }
 0x8ad   :  { %v1884_v11 = vmul.f32 -1.442695, %v1617_v2 }
 0x8ae   :  { %v1885_v12 = vmul.f32 -1.442695, %v1627_v9 }
 0x8af   :  { %3011 = vpow2.f32 %v1884_v11 }
 0x8b0   :  { %3013 = vpow2.f32 %v1885_v12 }
 0x8b9   :  { %v3012_v19 = vpop.eup %3011 }
 0x8ba   :  { %v3014_v1 = vpop.eup %3013  ;;  %v1621_v21 = vadd.f32 1.0, %v3012_v19 }
 0x8bb   :  { %v1631_v22 = vadd.f32 1.0, %v3014_v1 }
 0x8bc   :  { %3015 = vrcp.f32 %v1621_v21 }
 0x8bd   :  { %3017 = vrcp.f32 %v1631_v22 }
 0x8c6   :  { %v3016_v31 = vpop.eup %3015 }
 0x8c7   :  { %v3018_v39 = vpop.eup %3017  ;;  %v1638_v40 = vmul.f32 %v3016_v31, %v1636_v30 }
 0x8c8   :  { %v1645_v47 = vmul.f32 %v3018_v39, %v1643_v37  ;;  %v1641_v50 = vsub.f32 1.0, %v3018_v39 }
 0x8c9   :  { %v1639_v49 = vadd.f32 %v1638_v40, %v3408_v16 }
 0x8cb   :  { %3019 = vtanh.f32 %v1639_v49 }
 0x8d5   :  { %v3020_v57 = vpop.eup %3019 }
 0x8d6   :  { %v1642_v58 = vmul.f32 %v3020_v57, %v1641_v50 }
 0x8d8   :  { %v1646_v4 = vadd.f32 %v1645_v47, %v1642_v58 }
 0x8da   :  { %v1648_v5 = vrot.slane %v1646_v4, 6  ;;  %v1836_v6 = vsel %vm1835_vm7, %v3652_v3, %v1646_v4  ;;  %v1820_v44 = vrot.slane %v1646_v4, 7 }
 0x8dc   :  { %1715 = vmatmul.mubr.f32.vlgmr.msra.gmra.mrb[16].mxu1 %v1648_v5  ;;  %2406 = vmatmul.mubr.f32.vlgmr.msra.gmra.mrb[18].mxu0 %v1648_v5 }
 0x9af   :  { %v1716_v7 = vpop.f32.mrb[16].mxu1  ;;  %v1787_v10 = vpop.f32.mrb[18].mxu0 }
 0x9b0   :  { %v1792_v13 = vrot.slane %v1716_v7, 1  ;;  %v1718_v17 = vpop.f32.mrb[17].mxu1  ;;  %v2407_v18 = vpop.f32.mrb[19].mxu0  ;;  %v1811_v34 = vadd.f32 %v1787_v10, %v3417_v36 }
 0x9b1   :  { %v1802_v14 = vrot.slane %v1718_v17, 1 }
 0x9b2   :  { %v1794_v23 = vadd.f32 %v1792_v13, %v3406_v15  ;;  %v1813_v35 = vrot.slane %v1811_v34, 1 }
 0x9b3   :  { %v1804_v24 = vadd.f32 %v1802_v14, %v3410_v20 }
 0x9b4   :  { %v1886_v25 = vmul.f32 -1.442695, %v1794_v23 }
 0x9b5   :  { %v1887_v26 = vmul.f32 -1.442695, %v1804_v24 }
 0x9b6   :  { %3021 = vpow2.f32 %v1886_v25 }
 0x9b7   :  { %3023 = vpow2.f32 %v1887_v26 }
 0x9c0   :  { %v3022_v27 = vpop.eup %3021 }
 0x9c1   :  { %v3024_v29 = vpop.eup %3023  ;;  %v1798_v32 = vadd.f32 1.0, %v3022_v27 }
 0x9c2   :  { %v1808_v33 = vadd.f32 1.0, %v3024_v29 }
 0x9c3   :  { %3025 = vrcp.f32 %v1798_v32 }
 0x9c4   :  { %3027 = vrcp.f32 %v1808_v33 }
 0x9cd   :  { %v3026_v60 = vpop.eup %3025 }
 0x9ce   :  { %v3028_v38 = vpop.eup %3027  ;;  %v1815_v41 = vmul.f32 %v3026_v60, %v1813_v35 }
 0x9cf   :  { %v1822_v15 = vmul.f32 %v3028_v38, %v1820_v44  ;;  %v1818_v42 = vsub.f32 1.0, %v3028_v38 }
 0x9d0   :  { %v1816_v20 = vadd.f32 %v1815_v41, %v3408_v16 }
 0x9d2   :  { %3029 = vtanh.f32 %v1816_v20 }
 0x9dc   :  { %v3030_v43 = vpop.eup %3029 }
 0x9dd   :  { %v1819_v45 = vmul.f32 %v3030_v43, %v1818_v42 }
 0x9df   :  { %v1823_v46 = vadd.f32 %v1822_v15, %v1819_v45 }
 0x9e1   :  { %v1838_v36 = vsel %vm1837_vm8, %v1836_v6, %v1823_v46  ;;  %1824 = vst [vmem:[#allocation10 - $0x7] sm:$0x80] %v1823_v46 }
 0x9e2   :  { %1839 = vst [vmem:[#allocation9] sm:$0xff] %v1838_v36 }
 0x9e3   :  { %3108 = shalt.err (!%p3105_p0)
}
 0x9e4   :  { %s3109_s9 = scalar_lea.hbm %s3735_s8, 16 }
 0x9e5   :  { %p3110_p1 = scmp.ne.s32.totalorder %s3735_s8, %s3109_s9  ;;  %p3113_p2 = scmp.lt.u32.totalorder %s3109_s9, %s3735_s8 }
 0x9e7   :  { %p3115_p3 = pnand %p3113_p2, %p3110_p1 }
 0x9e9   :  { %3118 = shalt.err (!%p3115_p3)
}
 0x9ea   :  { %1859 = dma.vmem_to_hbm [thread:$0]  %s1857_s25, 16, %s3735_s8, [#allocation11]  }
 0x9eb   :  { %s3119_s18 = scalar_lea.vmem %s3696_s27, 128  ;;  %p3124_p5 = scmp.lt.s32.totalorder %s3696_s27, %s3696_s27 }
 0x9ec   :  { %p3120_p4 = scmp.ne.s32.totalorder %s3696_s27, %s3119_s18  ;;  %p3125_p6 = scmp.lt.s32.totalorder %s3119_s18, %s3119_s18 }
 0x9ee   :  { %p3126_p7 = por %p3125_p6, %p3124_p5 }
 0x9f0   :  { %p3127_p8 = pnand %p3126_p7, %p3120_p4 }
 0x9f2   :  { %3130 = shalt.err (!%p3127_p8)
}
 0x9f3   :  { %s3131_s22 = scalar_lea.hbm %s3734_s7, 128 }
 0x9f4   :  { %p3132_p9 = scmp.ne.s32.totalorder %s3734_s7, %s3131_s22  ;;  %p3135_p10 = scmp.lt.u32.totalorder %s3131_s22, %s3734_s7 }
 0x9f6   :  { %p3137_p11 = pnand %p3135_p10, %p3132_p9 }
 0x9f8   :  { %3140 = shalt.err (!%p3137_p11)
}
 0x9f9   :  { %1849 = dma.vmem_to_hbm [thread:$0]  %s3696_s27, 128, %s3734_s7, [#allocation5]  }
 0x9fa   :  { %3145 = dma.done.wait [#allocation5], 128  }
 0x9fb   :  { %3146 = vsyncadd [#allocation5], 4294967168 }
 0x9fc   :  { %3147 = dma.done.wait [#allocation11], 16  }
 0x9fd   :  { %3148 = vsyncadd [#allocation11], 4294967280 }
 0x9fe   :  { %1866 = vsyncpa [#allocation4], 1 }
 0x9ff   :  { %1867 = vsyncpa [#allocation7], 1 }
 0xa00   :  { %1868 = vsyncpa [#allocation5], 1 }
 0xa01   :  { %1869 = vsyncpa [#allocation11], 1 }

</bundles_post_ra>
